<compile_context>
chip_gen: v5e
topology: v5e:2x2
jax: 0.10.0
libtpu: 0.0.40
codegen_flags: <defaults>
</compile_context>

<pallas_src>
import numpy as np
import jax
import jax.numpy as jnp
from jax.experimental import pallas as pl


# ----------------------------------------------------------------------------
# Parameter / constant construction (exact replica of the torch __init__),
# with the static gather folded into a single (5, Dp) constant:
#   rows 0..3 : per-feature coefficient for each output column (one nonzero per column)
#   row 4     : 1.0 on "cos" columns, 0.0 on "sin" columns
# ----------------------------------------------------------------------------
def build_pos_emb_constants(
    wavelengths=((5, 30), (110, 123), (0.01, 5000), (100, 1600)), emb_dim=500, lane=128
):
    min_lat, max_lat = wavelengths[0]
    min_lon, max_lon = wavelengths[1]
    min_depth, max_depth = wavelengths[2]
    min_vs30, max_vs30 = wavelengths[3]
    assert emb_dim % 10 == 0
    lat_dim = emb_dim // 5
    lon_dim = emb_dim // 5
    depth_dim = emb_dim // 10
    vs30_dim = emb_dim // 10

    lat_coeff = 2 * np.pi / min_lat * (min_lat / max_lat) ** (np.arange(lat_dim) / lat_dim)
    lon_coeff = 2 * np.pi / min_lon * (min_lon / max_lon) ** (np.arange(lon_dim) / lon_dim)
    depth_coeff = 2 * np.pi / min_depth * (min_depth / max_depth) ** (np.arange(depth_dim) / depth_dim)
    vs30_coeff = 2 * np.pi / min_vs30 * (min_vs30 / max_vs30) ** (np.arange(vs30_dim) / vs30_dim)

    lat_sin_mask = np.arange(emb_dim) % 5 == 0
    lat_cos_mask = np.arange(emb_dim) % 5 == 1
    lon_sin_mask = np.arange(emb_dim) % 5 == 2
    lon_cos_mask = np.arange(emb_dim) % 5 == 3
    depth_sin_mask = np.arange(emb_dim) % 10 == 4
    depth_cos_mask = np.arange(emb_dim) % 10 == 9
    vs30_sin_mask = np.arange(emb_dim) % 10 == 5
    vs30_cos_mask = np.arange(emb_dim) % 10 == 8

    mask = np.zeros(emb_dim)
    mask[lat_sin_mask] = np.arange(lat_dim)
    mask[lat_cos_mask] = lat_dim + np.arange(lat_dim)
    mask[lon_sin_mask] = 2 * lat_dim + np.arange(lon_dim)
    mask[lon_cos_mask] = 2 * lat_dim + lon_dim + np.arange(lon_dim)
    mask[depth_sin_mask] = 2 * lat_dim + 2 * lon_dim + np.arange(depth_dim)
    mask[depth_cos_mask] = 2 * lat_dim + 2 * lon_dim + depth_dim + np.arange(depth_dim)
    mask[vs30_sin_mask] = 2 * lat_dim + 2 * lon_dim + 2 * depth_dim + np.arange(vs30_dim)
    mask[vs30_cos_mask] = 2 * lat_dim + 2 * lon_dim + 2 * depth_dim + vs30_dim + np.arange(vs30_dim)
    mask = mask.astype("int32")

    # Concatenated tensor (before the gather) along its last axis:
    #   [sin(lat), cos(lat), sin(lon), cos(lon), sin(depth), cos(depth), sin(vs30), cos(vs30)]
    coeff_cat = np.concatenate(
        [lat_coeff, lat_coeff, lon_coeff, lon_coeff,
         depth_coeff, depth_coeff, vs30_coeff, vs30_coeff]
    )
    src_cat = np.concatenate(
        [np.full(lat_dim, 0), np.full(lat_dim, 0),
         np.full(lon_dim, 1), np.full(lon_dim, 1),
         np.full(depth_dim, 2), np.full(depth_dim, 2),
         np.full(vs30_dim, 3), np.full(vs30_dim, 3)]
    ).astype("int32")
    iscos_cat = np.concatenate(
        [np.zeros(lat_dim), np.ones(lat_dim),
         np.zeros(lon_dim), np.ones(lon_dim),
         np.zeros(depth_dim), np.ones(depth_dim),
         np.zeros(vs30_dim), np.ones(vs30_dim)]
    )

    # Fold the static gather into per-output-column constants.
    coeff_full = coeff_cat[mask]      # (emb_dim,)
    src_full = src_cat[mask]          # (emb_dim,)
    iscos_full = iscos_cat[mask]      # (emb_dim,)

    # Pad 500 -> 512 lanes so the kernel output is lane-dense (unmasked full-vreg stores).
    padded_dim = ((emb_dim + lane - 1) // lane) * lane
    C = np.zeros((5, padded_dim), dtype=np.float32)
    C[src_full, np.arange(emb_dim)] = coeff_full.astype(np.float32)   # one nonzero per column
    C[4, :emb_dim] = iscos_full.astype(np.float32)                    # 1.0 on cos columns
    # Padded columns 500..511: coeff 0, iscos 0 -> sin(0) = 0 (dropped by the final slice).

    coeffs = (lat_coeff, lon_coeff, depth_coeff, vs30_coeff)
    return C, mask, coeffs


# ----------------------------------------------------------------------------
# Pallas kernel:
#   base = sum_k x0[:, 0, k] * C[k, :]     (4 exact f32 VPU broadcast MACs, no MXU)
#   out  = where(cos_lane, cos(base), sin(base))
# jnp.sin/cos lower to VPU range-reduction + polynomial; at B=2 this kernel is
# launch/DMA-overhead bound regardless, so computing both and selecting is free
# and keeps cos lanes bit-for-bit on torch's code path (no pi/2 phase fold).
# ----------------------------------------------------------------------------
def pos_emb_kernel(x_ref, c_ref, o_ref):
    x0 = x_ref[...]                                # (B, 1, 4): only the s=0 station row
    c = c_ref[...]                                 # (5, Dp)
    # Every output column has exactly one nonzero coefficient, so each base[b,0,j] is the
    # bit-exact f32 product x0[b,0,src[j]] * coeff[j] (same as torch's elementwise multiply).
    base = (x0[:, :, 0:1] * c[0:1, :]
            + x0[:, :, 1:2] * c[1:2, :]
            + x0[:, :, 2:3] * c[2:3, :]
            + x0[:, :, 3:4] * c[3:4, :])           # (B, 1, Dp)
    iscos = c[4:5, :] > 0.5                        # (1, Dp) static constant lane mask
    o_ref[...] = jnp.where(iscos, jnp.cos(base), jnp.sin(base))


def position_embedding_vs30(x, C, emb_dim):
    """x: (B, S, 4) float32  ->  (B, 1, emb_dim) float32 (torch-gather semantics)."""
    B, S, F = x.shape
    Dp = C.shape[1]
    # The torch.gather index has shape (B, 1, emb_dim): only the s=0 station row is ever
    # read, so slice it here (B*4 floats) and DMA only that into the kernel.
    x0 = x[:, 0:1, :]                              # (B, 1, 4)
    out = pl.pallas_call(
        pos_emb_kernel,
        out_shape=jax.ShapeDtypeStruct((B, 1, Dp), jnp.float32),
        in_specs=[
            pl.BlockSpec((B, 1, F), lambda: (0, 0, 0)),
            pl.BlockSpec((5, Dp), lambda: (0, 0)),
        ],
        out_specs=pl.BlockSpec((B, 1, Dp), lambda: (0, 0, 0)),
    )(x0, C)
    # Padded lanes (500..511) hold 0; in a real model the consumer can take the padded
    # lane-dense (B, 1, 512) slab directly and fuse this slice.
    return out[:, :, :emb_dim]


# ----------------------------------------------------------------------------
# Reference following the torch forward literally (f32 coeffs & products, as torch
# would compute them, then float64 sin/cos as an accurate oracle; concat + gather).
# ----------------------------------------------------------------------------
def torch_style_reference(x, coeffs, mask):
    lat_c, lon_c, dep_c, vs_c = [np.asarray(c, dtype=np.float32) for c in coeffs]
    x = np.asarray(x, dtype=np.float32)
    lat_base = (x[:, :, 0:1] * lat_c).astype(np.float64)
    lon_base = (x[:, :, 1:2] * lon_c).astype(np.float64)
    dep_base = (x[:, :, 2:3] * dep_c).astype(np.float64)
    vs_base = (x[:, :, 3:4] * vs_c).astype(np.float64)
    cat = np.concatenate(
        [np.sin(lat_base), np.cos(lat_base),
         np.sin(lon_base), np.cos(lon_base),
         np.sin(dep_base), np.cos(dep_base),
         np.sin(vs_base), np.cos(vs_base)], axis=-1)
    # torch.gather with index shape (B, 1, emb_dim): out[b, 0, j] = cat[b, 0, mask[j]]
    return cat[:, 0:1, :][:, :, mask]


if __name__ == "__main__":
    emb_dim = 500
    B, S = 2, 8

    C_np, mask_np, coeffs = build_pos_emb_constants(emb_dim=emb_dim)
    C = jnp.asarray(C_np)

    key = jax.random.PRNGKey(0)
    # Realistic station values: lat ~20-26 deg, lon ~119-123 deg, elevation ~0-3 km
    # (wavelength range 0.01-5000 is in km), Vs30 ~200-800 m/s.
    base = jax.random.uniform(key, (B, S, 4), dtype=jnp.float32)
    scale = jnp.asarray([6.0, 4.0, 3.0, 600.0], dtype=jnp.float32)
    shift = jnp.asarray([20.0, 119.0, 0.0, 200.0], dtype=jnp.float32)
    x = base * scale + shift  # (B, S, 4) float32

    out = position_embedding_vs30(x, C, emb_dim)
    out = jax.block_until_ready(out)

    ref = torch_style_reference(np.asarray(x), coeffs, mask_np)
    assert out.shape == (B, 1, emb_dim), out.shape
    # Multiply is bit-exact f32; sin/cos are computed on torch's exact code path, so the only
    # remaining difference is the f32 sin/cos implementation at the largest (depth) arguments.
    np.testing.assert_allclose(np.asarray(out), ref, rtol=0.0, atol=2e-3)

    print("KERNEL_OK")
</pallas_src>

<mosaic_0001>
module attributes {stable_mosaic.version = 11 : i64} {
  func.func @pos_emb_kernel(%arg0: memref<2x1x4xf32, #tpu.memory_space<vmem>>, %arg1: memref<5x512xf32, #tpu.memory_space<vmem>>, %arg2: memref<2x1x512xf32, #tpu.memory_space<vmem>>) attributes {dimension_semantics = [], scalar_prefetch = 0 : i64, scratch_operands = 0 : i64, tpu.core_type = #tpu.core_type<tc>} {
    %c0 = arith.constant 0 : index
    %c0_0 = arith.constant 0 : index
    %c0_1 = arith.constant 0 : index
    %0 = vector.load %arg0[%c0, %c0_0, %c0_1] : memref<2x1x4xf32, #tpu.memory_space<vmem>>, vector<2x1x4xf32>
    %c0_2 = arith.constant 0 : index
    %c0_3 = arith.constant 0 : index
    %1 = vector.load %arg1[%c0_2, %c0_3] : memref<5x512xf32, #tpu.memory_space<vmem>>, vector<5x512xf32>
    %2 = vector.extract_strided_slice %0 {offsets = [0, 0, 0], sizes = [2, 1, 1], strides = [1, 1, 1]} : vector<2x1x4xf32> to vector<2x1x1xf32>
    %3 = vector.extract_strided_slice %1 {offsets = [0, 0], sizes = [1, 512], strides = [1, 1]} : vector<5x512xf32> to vector<1x512xf32>
    %4 = vector.shape_cast %3 : vector<1x512xf32> to vector<1x1x512xf32>
    %5 = vector.broadcast %2 : vector<2x1x1xf32> to vector<2x1x512xf32>
    %6 = vector.broadcast %4 : vector<1x1x512xf32> to vector<2x1x512xf32>
    %7 = arith.mulf %5, %6 : vector<2x1x512xf32>
    %8 = vector.extract_strided_slice %0 {offsets = [0, 0, 1], sizes = [2, 1, 1], strides = [1, 1, 1]} : vector<2x1x4xf32> to vector<2x1x1xf32>
    %9 = vector.extract_strided_slice %1 {offsets = [1, 0], sizes = [1, 512], strides = [1, 1]} : vector<5x512xf32> to vector<1x512xf32>
    %10 = vector.shape_cast %9 : vector<1x512xf32> to vector<1x1x512xf32>
    %11 = vector.broadcast %8 : vector<2x1x1xf32> to vector<2x1x512xf32>
    %12 = vector.broadcast %10 : vector<1x1x512xf32> to vector<2x1x512xf32>
    %13 = arith.mulf %11, %12 : vector<2x1x512xf32>
    %14 = arith.addf %7, %13 : vector<2x1x512xf32>
    %15 = vector.extract_strided_slice %0 {offsets = [0, 0, 2], sizes = [2, 1, 1], strides = [1, 1, 1]} : vector<2x1x4xf32> to vector<2x1x1xf32>
    %16 = vector.extract_strided_slice %1 {offsets = [2, 0], sizes = [1, 512], strides = [1, 1]} : vector<5x512xf32> to vector<1x512xf32>
    %17 = vector.shape_cast %16 : vector<1x512xf32> to vector<1x1x512xf32>
    %18 = vector.broadcast %15 : vector<2x1x1xf32> to vector<2x1x512xf32>
    %19 = vector.broadcast %17 : vector<1x1x512xf32> to vector<2x1x512xf32>
    %20 = arith.mulf %18, %19 : vector<2x1x512xf32>
    %21 = arith.addf %14, %20 : vector<2x1x512xf32>
    %22 = vector.extract_strided_slice %0 {offsets = [0, 0, 3], sizes = [2, 1, 1], strides = [1, 1, 1]} : vector<2x1x4xf32> to vector<2x1x1xf32>
    %23 = vector.extract_strided_slice %1 {offsets = [3, 0], sizes = [1, 512], strides = [1, 1]} : vector<5x512xf32> to vector<1x512xf32>
    %24 = vector.shape_cast %23 : vector<1x512xf32> to vector<1x1x512xf32>
    %25 = vector.broadcast %22 : vector<2x1x1xf32> to vector<2x1x512xf32>
    %26 = vector.broadcast %24 : vector<1x1x512xf32> to vector<2x1x512xf32>
    %27 = arith.mulf %25, %26 : vector<2x1x512xf32>
    %28 = arith.addf %21, %27 : vector<2x1x512xf32>
    %29 = vector.extract_strided_slice %1 {offsets = [4, 0], sizes = [1, 512], strides = [1, 1]} : vector<5x512xf32> to vector<1x512xf32>
    %cst = arith.constant 5.000000e-01 : f32
    %30 = vector.broadcast %cst : f32 to vector<1x512xf32>
    %31 = arith.cmpf ogt, %29, %30 : vector<1x512xf32>
    %32 = math.cos %28 : vector<2x1x512xf32>
    %33 = math.sin %28 : vector<2x1x512xf32>
    %34 = vector.shape_cast %31 : vector<1x512xi1> to vector<1x1x512xi1>
    %35 = vector.broadcast %34 : vector<1x1x512xi1> to vector<2x1x512xi1>
    %36 = arith.select %35, %32, %33 : vector<2x1x512xi1>, vector<2x1x512xf32>
    %c0_4 = arith.constant 0 : index
    %c0_5 = arith.constant 0 : index
    %c0_6 = arith.constant 0 : index
    %37 = vector.load %arg2[%c0_4, %c0_5, %c0_6] : memref<2x1x512xf32, #tpu.memory_space<vmem>>, vector<2x1x512xf32>
    tpu.vector_store %arg2[%c0_4, %c0_5, %c0_6], %36 {strides = array<i32>} : memref<2x1x512xf32, #tpu.memory_space<vmem>>, vector<2x1x512xf32>,
    return
  }
}

</mosaic_0001>

<bundles_post_ra>
// kernel: tpu_custom_call.1
= control target key start
LH: loop header
LB: loop body
LE: loop exit
PB: predicated region body
PF: predicated region fallthrough
CT: control target
= control target key end

     0   :  { %7 = vsyncpa [#allocation3], 0  ;;  %s4442_s0 = inlined_call_operand.hbm [shape: f32[2,1,4], index: 0, kind: input, shape index: {}]   ;;  %s4443_s1 = inlined_call_operand.hbm [shape: f32[5,512], index: 1, kind: input, shape index: {}]   ;;  %s4444_s2 = inlined_call_operand.hbm [shape: f32[2,1,512], index: 2, kind: output, shape index: {}]  }
   0x1   :  { %8 = vsyncpa [#allocation6], 0 }
   0x2   :  { %9 = vsyncpa [#allocation4], 0  ;;  %s14_s11 = sshll.u32 %s4442_s0, 4  ;;  %s2964_s12 = smov [#allocation2]   ;;  %s15_s11 = int_to_ptr.hbm [resolvable:$true] %s14_s11 }
   0x3   :  { %s16_s13 = sshll.u32 %s2964_s12, 4  ;;  %s28_s16 = sshll.u32 %s4443_s1, 4  ;;  %s17_s13 = int_to_ptr.vmem [resolvable:$true] %s16_s13  ;;  %s29_s16 = int_to_ptr.hbm [resolvable:$true] %s28_s16 }
   0x4   :  { %s2965_s17 = smov 16   ;;  %s2966_s18 = smov 1  }
   0x5   :  { %22 = dma.hbm_to_vmem [thread:$0]  %s15_s11, 32, %s17_s13, [#allocation3], %s2965_s17, %s2965_s17, %s2966_s18  }
   0x6   :  { %s2967_s19 = smov [#allocation5]  }
   0x7   :  { %s30_s20 = sshll.u32 %s2967_s19, 4  ;;  %s31_s20 = int_to_ptr.vmem [resolvable:$true] %s30_s20 }
   0x8   :  { %33 = dma.hbm_to_vmem [thread:$0]  %s29_s16, 512, %s31_s20, [#allocation6]  }
   0x9   :  { %2958 = dma.done.wait [#allocation3], 32  }
   0xa   :  { %2959 = vsyncadd [#allocation3], 4294967264 }
   0xb   :  { %2960 = dma.done.wait [#allocation6], 512  }
   0xc   :  { %2961 = vsyncadd [#allocation6], 4294966784  ;;  %v2968_v0 = vmov 2   ;;  %v2969_v1 = vmov 1   ;;  %v42_v2 = vld [vmem:[#allocation2] sm:$0x1] }
   0xd   :  { %2872 = vset.pattern.permute.xlu1 %v2968_v0  ;;  %2870 = vset.pattern.permute.xlu0 %v2969_v1  ;;  %v43_v3 = vld [vmem:[#allocation2 + $0x1] sm:$0x1]  ;;  %v2970_v4 = vmov 3   ;;  %v2971_v5 = vmov 0   ;;  %v3006_v9 = vld [vmem:[#allocation5] sm:$0x1f] }
   0xe   :  { %2874 = vset.pattern.permute.xlu2 %v2969_v1  ;;  %119 = vperm.xlu1 %2872, %v42_v2   ;;  %v45_v10 = vld [vmem:[#allocation5 + $0x8] sm:$0x1f]  ;;  %v46_v11 = vld [vmem:[#allocation5 + $0x10] sm:$0x1f]  ;;  %s2978_s0 = smov [#allocation7]   ;;  %s2791_s23 = sshll.u32 %s4444_s2, 4  ;;  %s2792_s23 = int_to_ptr.hbm [resolvable:$true] %s2791_s23 }
   0xf   :  { %69 = vperm.xlu0 %2870, %v42_v2   ;;  %74 = vperm.xlu2 %2874, %v43_v3   ;;  %s2789_s1 = sshll.u32 %s2978_s0, 4  ;;  %s2979_s24 = smov 64   ;;  %s2790_s1 = int_to_ptr.vmem [resolvable:$true] %s2789_s1 }
  0x10   :  { %s2980_s25 = smov 4  }
  0x16   :  { %2873 = vset.pattern.permute.xlu1 %v2970_v4 }
  0x17   :  { %2871 = vset.pattern.permute.xlu0 %v2971_v5  ;;  %169 = vperm.xlu1 %2873, %v42_v2  }
  0x18   :  { %50 = vperm.xlu0 %2871, %v42_v2   ;;  %2875 = vset.pattern.permute.xlu2 %v2971_v5 }
  0x19   :  { %56 = vperm.xlu2 %2875, %v43_v3  }
  0x1f   :  { %2876 = vset.pattern.permute.xlu1 %v2968_v0 }
  0x20   :  { %2878 = vset.pattern.permute.xlu0 %v2970_v4  ;;  %124 = vperm.xlu1 %2876, %v43_v3  }
  0x21   :  { %2877 = vset.pattern.permute.xlu2 %v2970_v4 }
  0x22   :  { %174 = vperm.xlu2 %2877, %v43_v3  }
  0x80   :  { %v120_v6 = vpop.permute.xlu1 %119 }
  0x81   :  { %v70_v7 = vpop.permute.xlu0 %69  ;;  %v3008_v12 = vperm.slane %v120_v6, 0 }
  0x82   :  { %v3004_v8 = vperm.slane %v70_v7, 0 }
  0x83   :  { %v128_v18 = vmul.f32 %v3008_v12, %v3006_v9  ;;  %v129_v19 = vmul.f32 %v3008_v12, %v45_v10  ;;  %v130_v22 = vmul.f32 %v3008_v12, %v46_v11 }
  0x84   :  { %v78_v13 = vmul.f32 %v3004_v8, %v3006_v9  ;;  %v79_v14 = vmul.f32 %v3004_v8, %v45_v10  ;;  %v80_v15 = vmul.f32 %v3004_v8, %v46_v11 }
  0x85   :  { %v144_v31 = vrot.slane %v128_v18, 2  ;;  %v145_v32 = vrot.slane %v129_v19, 2  ;;  %v146_v34 = vrot.slane %v130_v22, 2  ;;  %v4457_v22 = vmov 2131351028  }
  0x86   :  { %v94_v23 = vrot.slane %v78_v13, 1  ;;  %v95_v24 = vrot.slane %v79_v14, 1  ;;  %v96_v25 = vrot.slane %v80_v15, 1  ;;  %v4463_v14 = vmov 683565275  }
  0x89   :  { %v170_v16 = vpop.permute.xlu1 %169 }
  0x8a   :  { %v51_v17 = vpop.permute.xlu0 %50  ;;  %v3017_v20 = vperm.slane %v170_v16, 0  ;;  %v4461_v16 = vmov 2475754826  }
  0x8b   :  { %v3019_v21 = vperm.slane %v51_v17, 0 }
  0x8c   :  { %v178_v26 = vmul.f32 %v3017_v20, %v3006_v9  ;;  %v179_v27 = vmul.f32 %v3017_v20, %v45_v10  ;;  %v180_v33 = vmul.f32 %v3017_v20, %v46_v11 }
  0x8d   :  { %v60_v28 = vmul.f32 %v3019_v21, %v3006_v9  ;;  %v61_v29 = vmul.f32 %v3019_v21, %v45_v10  ;;  %v62_v30 = vmul.f32 %v3019_v21, %v46_v11 }
  0x8e   :  { %v194_v38 = vrot.slane %v178_v26, 3  ;;  %v195_v39 = vrot.slane %v179_v27, 3  ;;  %v196_v43 = vrot.slane %v180_v33, 3 }
  0x8f   :  { %v110_v35 = vadd.f32 %v94_v23, %v60_v28  ;;  %v111_v36 = vadd.f32 %v95_v24, %v61_v29  ;;  %v112_v37 = vadd.f32 %v96_v25, %v62_v30  ;;  %v4455_v25 = vmov 2102212464  }
  0x90   :  { %v4453_v28 = vmov 920167782  }
  0x91   :  { %v160_v40 = vadd.f32 %v144_v31, %v110_v35  ;;  %v161_v41 = vadd.f32 %v145_v32, %v111_v36  ;;  %v162_v42 = vadd.f32 %v146_v34, %v112_v37  ;;  %v4446_v31 = vmov 1326507024  }
  0x93   :  { %v3030_v44 = vadd.f32 %v194_v38, %v160_v40  ;;  %v3032_v45 = vadd.f32 %v195_v39, %v161_v41  ;;  %v3034_v46 = vadd.f32 %v196_v43, %v162_v42 }
  0x95   :  { %v222_v47 = vand.u32 2147483647, %v3030_v44  ;;  %v225_v48 = vand.u32 2139095040, %v3030_v44  ;;  %v376_v49 = vand.u32 2147483647, %v3032_v45  ;;  %v379_v50 = vand.u32 2139095040, %v3032_v45 }
  0x96   :  { %v533_v55 = vand.u32 2139095040, %v3034_v46 }
  0x97   :  { %v226_v51 = vshrl.u32 %v225_v48, 23  ;;  %v229_v52 = vand.u32 8388607, %v222_v47  ;;  %v380_v53 = vshrl.u32 %v379_v50, 23  ;;  %v383_v54 = vand.u32 8388607, %v376_v49 }
  0x98   :  { %v534_v62 = vshrl.u32 %v533_v55, 23 }
  0x99   :  { %v2805_v56 = vadd.s32 4294967169, %v226_v51  ;;  %v230_v57 = vor.u32 8388608, %v229_v52  ;;  %v2808_v58 = vadd.s32 4294967169, %v380_v53  ;;  %v384_v59 = vor.u32 8388608, %v383_v54 }
  0x9a   :  { %v3049_v4 = vadd.s32 4294967169, %v534_v62 }
  0x9b   :  { %v232_v60 = vadd.s32 1, %v2805_v56  ;;  %v386_v61 = vadd.s32 1, %v2808_v58  ;;  %v3045_v63 = vshll.u32 %v230_v57, 8  ;;  %v3047_v1 = vshll.u32 %v384_v59, 8 }
  0x9d   :  { %vm233_vm0 = vcmp.gt.s32.totalorder %v232_v60, 0  ;;  %vm387_vm1 = vcmp.gt.s32.totalorder %v386_v61, 0  ;;  %v3052_v7 = vand.u32 65535, %v3045_v63  ;;  %v3055_v10 = vshrl.u32 %v3045_v63, 16 }
  0x9e   :  { %v234_v0 = vsel %vm233_vm0, %v232_v60, 0  ;;  %v388_v3 = vsel %vm387_vm1, %v386_v61, 0  ;;  %v3064_v18 = vand.u32 65535, %v3047_v1 }
  0x9f   :  { %v236_v2 = vand.u32 31, %v234_v0  ;;  %v3057_v11 = vand.u32 31, %v388_v3  ;;  %v3059_v13 = vshrl.u32 %v234_v0, 5 }
  0xa1   :  { %v237_v6 = vsub.s32 32, %v236_v2  ;;  %v239_v15 = vshll.u32 %v4463_v14, %v236_v2  ;;  %v242_v17 = vshll.u32 %v4461_v16, %v236_v2  ;;  %v245_v24 = vshll.u32 %v4457_v22, %v236_v2 }
  0xa2   :  { %v248_v27 = vshll.u32 %v4455_v25, %v236_v2  ;;  %v251_v30 = vshll.u32 %v4453_v28, %v236_v2  ;;  %v3075_v36 = vsub.s32 32, %v3057_v11  ;;  %vm254_vm2 = vcmp.lt.s32.totalorder %v3059_v13, 1 }
  0xa3   :  { %v240_v19 = vshrl.u32 %v4461_v16, %v237_v6  ;;  %v243_v23 = vshrl.u32 %v4457_v22, %v237_v6  ;;  %v246_v26 = vshrl.u32 %v4455_v25, %v237_v6  ;;  %v249_v29 = vshrl.u32 %v4453_v28, %v237_v6 }
  0xa4   :  { %v252_v32 = vshrl.u32 %v4446_v31, %v237_v6  ;;  %vm255_vm3 = vcmp.lt.s32.totalorder %v3059_v13, 2  ;;  %v238_v39 = vshrl.u32 %v4463_v14, %v237_v6  ;;  %vm257_vm4 = vcmp.lt.s32.totalorder %v3059_v13, 4 }
  0xa5   :  { %v241_v33 = vor.u32 %v240_v19, %v239_v15  ;;  %v244_v34 = vor.u32 %v243_v23, %v242_v17  ;;  %v247_v35 = vor.u32 %v246_v26, %v245_v24  ;;  %v250_v37 = vor.u32 %v249_v29, %v248_v27 }
  0xa6   :  { %v253_v38 = vor.u32 %v252_v32, %v251_v30  ;;  %vm256_vm5 = vcmp.lt.s32.totalorder %v3059_v13, 3  ;;  %v393_v48 = vshll.u32 %v4463_v14, %v3057_v11  ;;  %v394_v53 = vshrl.u32 %v4461_v16, %v3075_v36 }
  0xa7   :  { %v262_v40 = vsel %vm254_vm2, %v241_v33, %v244_v34  ;;  %v266_v41 = vsel %vm254_vm2, %v244_v34, %v247_v35  ;;  %v263_v42 = vsel %vm257_vm4, %v250_v37, 920167782  ;;  %v259_v50 = vsel %vm257_vm4, %v247_v35, 2102212464 }
  0xa8   :  { %v267_v43 = vsel %vm257_vm4, %v253_v38, 1326507024  ;;  %v264_v51 = vsel %vm256_vm5, %v247_v35, %v263_v42  ;;  %v396_v56 = vshll.u32 %v4461_v16, %v3057_v11  ;;  %v397_v57 = vshrl.u32 %v4457_v22, %v3075_v36 }
  0xa9   :  { %v268_v52 = vsel %vm256_vm5, %v250_v37, %v267_v43  ;;  %v265_v54 = vsel %vm255_vm3, %v262_v40, %v264_v51  ;;  %v258_v62 = vsel %vm254_vm2, %v238_v39, %v241_v33  ;;  %v260_v0 = vsel %vm256_vm5, %v244_v34, %v259_v50 }
  0xaa   :  { %v269_v55 = vsel %vm255_vm3, %v266_v41, %v268_v52  ;;  %v295_v60 = vand.u32 65535, %v265_v54  ;;  %v296_v61 = vshrl.u32 %v265_v54, 16  ;;  %v3106_v2 = vshrl.u32 %v388_v3, 5 }
  0xab   :  { %v273_v58 = vand.u32 65535, %v269_v55  ;;  %v274_v59 = vshrl.u32 %v269_v55, 16  ;;  %v3108_v6 = vor.u32 %v394_v53, %v393_v48  ;;  %v3112_v19 = vor.u32 %v397_v57, %v396_v56 }
  0xac   :  { %v400_v23 = vshrl.u32 %v4455_v25, %v3075_v36  ;;  %v298_v26 = vmul.u32 %v296_v61, %v3052_v7  ;;  %v299_v27 = vmul.u32 %v295_v60, %v3055_v10  ;;  %v399_v3 = vshll.u32 %v4457_v22, %v3057_v11 }
  0xad   :  { %v276_v15 = vmul.u32 %v274_v59, %v3052_v7  ;;  %v277_v17 = vmul.u32 %v273_v58, %v3055_v10  ;;  %v275_v24 = vmul.u32 %v273_v58, %v3052_v7  ;;  %v278_v29 = vmul.u32 %v274_v59, %v3055_v10 }
  0xae   :  { %v297_v32 = vmul.u32 %v295_v60, %v3052_v7  ;;  %v300_v33 = vmul.u32 %v296_v61, %v3055_v10  ;;  %v301_v38 = vshll.u32 %v298_v26, 16  ;;  %v303_v40 = vshll.u32 %v299_v27, 16 }
  0xaf   :  { %v279_v30 = vshll.u32 %v276_v15, 16  ;;  %v280_v34 = vshrl.u32 %v276_v15, 16  ;;  %v281_v35 = vshll.u32 %v277_v17, 16  ;;  %v282_v37 = vshrl.u32 %v277_v17, 16 }
  0xb0   :  { %v3124_v41 = vor.u32 %v400_v23, %v399_v3  ;;  %vm305_vm7 = vc.u32 %v297_v32, %v301_v38  ;;  %v307_v43 = vadd.s32 %v301_v38, %v297_v32  ;;  %v403_v48 = vshrl.u32 %v4453_v28, %v3075_v36 }
  0xb1   :  { %vm283_vm6 = vc.u32 %v275_v24, %v279_v30  ;;  %v285_v39 = vadd.s32 %v279_v30, %v275_v24  ;;  %v306_v7 = vsel %vm305_vm7, 1, %v2971_v5  ;;  %v402_v10 = vshll.u32 %v4455_v25, %v3057_v11 }
  0xb2   :  { %v284_v42 = vsel %vm283_vm6, 1, %v2971_v5  ;;  %v308_v52 = vadd.s32 %v306_v7, %v300_v33  ;;  %vm309_vm9 = vc.u32 %v307_v43, %v303_v40  ;;  %v405_v53 = vshll.u32 %v4453_v28, %v3057_v11 }
  0xb3   :  { %v286_v50 = vadd.s32 %v284_v42, %v278_v29  ;;  %vm287_vm8 = vc.u32 %v285_v39, %v281_v35  ;;  %v310_v55 = vsel %vm309_vm9, 1, %v2971_v5  ;;  %v404_v56 = vor.u32 %v403_v48, %v402_v10 }
  0xb4   :  { %v288_v51 = vsel %vm287_vm8, 1, %v2971_v5  ;;  %v406_v57 = vshrl.u32 %v4446_v31, %v3075_v36  ;;  %v302_v58 = vshrl.u32 %v298_v26, 16  ;;  %v304_v59 = vshrl.u32 %v299_v27, 16 }
  0xb5   :  { %v290_v54 = vadd.s32 %v288_v51, %v286_v50  ;;  %v3138_v60 = vadd.s32 %v307_v43, %v303_v40  ;;  %v312_v61 = vadd.s32 %v310_v55, %v308_v52  ;;  %vm408_vm10 = vcmp.lt.s32.totalorder %v3106_v2, 1 }
  0xb6   :  { %v407_v17 = vor.u32 %v406_v57, %v405_v53  ;;  %vm411_vm11 = vcmp.lt.s32.totalorder %v3106_v2, 4  ;;  %vm410_vm12 = vcmp.lt.s32.totalorder %v3106_v2, 3  ;;  %v416_v11 = vsel %vm408_vm10, %v3108_v6, %v3112_v19 }
  0xb7   :  { %v291_v15 = vadd.s32 %v290_v54, %v280_v34  ;;  %v313_v23 = vadd.s32 %v312_v61, %v302_v58  ;;  %v417_v24 = vsel %vm411_vm11, %v404_v56, 920167782  ;;  %vm409_vm13 = vcmp.lt.s32.totalorder %v3106_v2, 2 }
  0xb8   :  { %v418_v27 = vsel %vm410_vm12, %v3124_v41, %v417_v24  ;;  %v420_v3 = vsel %vm408_vm10, %v3112_v19, %v3124_v41  ;;  %v261_v29 = vsel %vm255_vm3, %v258_v62, %v260_v0  ;;  %v421_v33 = vsel %vm411_vm11, %v407_v17, 1326507024 }
  0xb9   :  { %v3149_v26 = vadd.s32 %v291_v15, %v282_v37  ;;  %v314_v30 = vadd.s32 %v313_v23, %v304_v59  ;;  %v419_v32 = vsel %vm409_vm13, %v416_v11, %v418_v27  ;;  %v422_v34 = vsel %vm410_vm12, %v404_v56, %v421_v33 }
  0xba   :  { %v426_v35 = vshrl.u32 %v3047_v1, 16  ;;  %v449_v37 = vand.u32 65535, %v419_v32  ;;  %v423_v13 = vsel %vm409_vm13, %v420_v3, %v422_v34  ;;  %v450_v62 = vshrl.u32 %v419_v32, 16 }
  0xbb   :  { %vm317_vm14 = vc.u32 %v3149_v26, %v3138_v60  ;;  %v318_v38 = vadd.s32 1, %v314_v30  ;;  %v540_v0 = vadd.s32 1, %v3049_v4  ;;  %v315_v39 = vmul.u32 %v3045_v63, %v261_v29 }
  0xbc   :  { %v427_v40 = vand.u32 65535, %v423_v13  ;;  %v428_v42 = vshrl.u32 %v423_v13, 16  ;;  %v452_v48 = vmul.u32 %v450_v62, %v3064_v18  ;;  %v453_v50 = vmul.u32 %v449_v37, %v426_v35 }
  0xbd   :  { %v319_v43 = vsel %vm317_vm14, %v318_v38, %v314_v30  ;;  %v451_v52 = vmul.u32 %v449_v37, %v3064_v18  ;;  %v454_v53 = vmul.u32 %v450_v62, %v426_v35  ;;  %vm541_vm15 = vcmp.gt.s32.totalorder %v540_v0, 0 }
  0xbe   :  { %v320_v7 = vadd.s32 %v319_v43, %v315_v39  ;;  %v430_v10 = vmul.u32 %v428_v42, %v3064_v18  ;;  %v431_v51 = vmul.u32 %v427_v40, %v426_v35  ;;  %v455_v54 = vshll.u32 %v452_v48, 16 }
  0xbf   :  { %v429_v4 = vmul.u32 %v427_v40, %v3064_v18  ;;  %v432_v56 = vmul.u32 %v428_v42, %v426_v35  ;;  %v457_v58 = vshll.u32 %v453_v50, 16  ;;  %v413_v18 = vsel %vm411_vm11, %v3124_v41, 2102212464 }
  0xc0   :  { %v321_v55 = vadd.s32 536870912, %v320_v7  ;;  %v433_v63 = vshll.u32 %v430_v10, 16  ;;  %v435_v57 = vshll.u32 %v431_v51, 16  ;;  %vm459_vm0 = vc.u32 %v451_v52, %v455_v54 }
  0xc1   :  { %v461_v59 = vadd.s32 %v455_v54, %v451_v52  ;;  %v460_v17 = vsel %vm459_vm0, 1, %v2971_v5  ;;  %v542_v30 = vsel %vm541_vm15, %v540_v0, 0  ;;  %v392_v32 = vshrl.u32 %v4463_v14, %v3075_v36 }
  0xc2   :  { %v3178_v61 = vshrl.u32 %v321_v55, 30  ;;  %vm437_vm1 = vc.u32 %v429_v4, %v433_v63  ;;  %v439_v15 = vadd.s32 %v433_v63, %v429_v4  ;;  %v462_v11 = vadd.s32 %v460_v17, %v454_v53 }
  0xc3   :  { %v438_v23 = vsel %vm437_vm1, 1, %v2971_v5  ;;  %vm463_vm2 = vc.u32 %v461_v59, %v457_v58  ;;  %v434_v33 = vshrl.u32 %v430_v10, 16  ;;  %v456_v37 = vshrl.u32 %v452_v48, 16 }
  0xc4   :  { %v323_v24 = vshll.u32 %v3178_v61, 30  ;;  %v440_v27 = vadd.s32 %v438_v23, %v432_v56  ;;  %vm441_vm3 = vc.u32 %v439_v15, %v435_v57  ;;  %v464_v29 = vsel %vm463_vm2, 1, %v2971_v5 }
  0xc5   :  { %v442_v3 = vsel %vm441_vm3, 1, %v2971_v5  ;;  %v466_v35 = vadd.s32 %v464_v29, %v462_v11  ;;  %v530_v38 = vand.u32 2147483647, %v3034_v46  ;;  %v544_v13 = vand.u32 31, %v542_v30 }
  0xc6   :  { %v444_v34 = vadd.s32 %v442_v3, %v440_v27  ;;  %v3192_v62 = vsub.s32 %v320_v7, %v323_v24  ;;  %v412_v41 = vsel %vm408_vm10, %v392_v32, %v3108_v6  ;;  %v414_v0 = vsel %vm410_vm12, %v3112_v19, %v413_v18 }
  0xc7   :  { %v436_v40 = vshrl.u32 %v431_v51, 16  ;;  %v458_v36 = vshrl.u32 %v453_v50, 16  ;;  %v467_v42 = vadd.s32 %v466_v35, %v456_v37  ;;  %v3200_v43 = vsub.s32 32, %v544_v13 }
  0xc8   :  { %v445_v39 = vadd.s32 %v444_v34, %v434_v33  ;;  %v415_v48 = vsel %vm409_vm13, %v412_v41, %v414_v0  ;;  %v3206_v7 = vadd.s32 %v461_v59, %v457_v58  ;;  %vm325_vm4 = vcmp.lt.s32.totalorder %v3192_v62, 0  ;;  %v3258_v0 = vld [vmem:[#allocation5 + $0x18] sm:$0x1f] }
  0xc9   :  { %v468_v52 = vadd.s32 %v467_v42, %v458_v36  ;;  %v326_v6 = vsub.s32 0, %v3192_v62  ;;  %v537_v19 = vand.u32 8388607, %v530_v38  ;;  %v548_v50 = vshrl.u32 %v4461_v16, %v3200_v43 }
  0xca   :  { %v3204_v10 = vadd.s32 %v445_v39, %v436_v40  ;;  %v551_v51 = vshrl.u32 %v4457_v22, %v3200_v43  ;;  %v554_v53 = vshrl.u32 %v4455_v25, %v3200_v43  ;;  %v469_v54 = vmul.u32 %v3047_v1, %v415_v48 }
  0xcb   :  { %v472_v2 = vadd.s32 1, %v468_v52  ;;  %v3221_v55 = vshrl.u32 %v542_v30, 5  ;;  %v547_v4 = vshll.u32 %v4463_v14, %v544_v13  ;;  %v550_v56 = vshll.u32 %v4461_v16, %v544_v13 }
  0xcc   :  { %vm471_vm5 = vc.u32 %v3204_v10, %v3206_v7  ;;  %v553_v57 = vshll.u32 %v4457_v22, %v544_v13  ;;  %v556_v58 = vshll.u32 %v4455_v25, %v544_v13  ;;  %v557_v59 = vshrl.u32 %v4453_v28, %v3200_v43 }
  0xcd   :  { %v473_v63 = vsel %vm471_vm5, %v472_v2, %v468_v52  ;;  %v327_v15 = vsel %vm325_vm4, %v326_v6, %v3192_v62  ;;  %v3232_v1 = vor.u32 %v548_v50, %v547_v4  ;;  %v560_v23 = vshrl.u32 %v4446_v31, %v3200_v43 }
  0xce   :  { %v474_v17 = vadd.s32 %v473_v63, %v469_v54  ;;  %v3236_v11 = vor.u32 %v551_v51, %v550_v56  ;;  %v3238_v24 = vor.u32 %v554_v53, %v553_v57  ;;  %v558_v27 = vor.u32 %v557_v59, %v556_v58 }
  0xcf   :  { %v559_v18 = vshll.u32 %v4453_v28, %v544_v13  ;;  %v538_v29 = vor.u32 8388608, %v537_v19  ;;  %v328_v30 = vclz %v327_v15  ;;  %vm565_vm6 = vcmp.lt.s32.totalorder %v3221_v55, 4 }
  0xd0   :  { %v475_v3 = vadd.s32 536870912, %v474_v17  ;;  %vm562_vm7 = vcmp.lt.s32.totalorder %v3221_v55, 1  ;;  %vm564_vm8 = vcmp.lt.s32.totalorder %v3221_v55, 3  ;;  %v571_v34 = vsel %vm565_vm6, %v558_v27, 920167782 }
  0xd1   :  { %v561_v32 = vor.u32 %v560_v23, %v559_v18  ;;  %v570_v35 = vsel %vm562_vm7, %v3232_v1, %v3236_v11  ;;  %v572_v37 = vsel %vm564_vm8, %v3238_v24, %v571_v34  ;;  %v3256_v41 = vshll.u32 %v538_v29, 8 }
  0xd2   :  { %v3242_v33 = vshrl.u32 %v475_v3, 30  ;;  %v2806_v39 = vadd.s32 4294967294, %v328_v30  ;;  %vm563_vm9 = vcmp.lt.s32.totalorder %v3221_v55, 2  ;;  %v574_v40 = vsel %vm562_vm7, %v3236_v11, %v3238_v24 }
  0xd3   :  { %v575_v36 = vsel %vm565_vm6, %v561_v32, 1326507024  ;;  %v573_v48 = vsel %vm563_vm9, %v570_v35, %v572_v37  ;;  %v81_v19 = vmul.f32 %v3004_v8, %v3258_v0  ;;  %v579_v51 = vand.u32 65535, %v3256_v41 }
  0xd4   :  { %v477_v13 = vshll.u32 %v3242_v33, 30  ;;  %v576_v52 = vsel %vm564_vm8, %v558_v27, %v575_v36  ;;  %vm2807_vm11 = vcmp.lt.s32.totalorder %v2806_v39, 0  ;;  %v604_v54 = vshrl.u32 %v573_v48, 16 }
  0xd5   :  { %v577_v6 = vsel %vm563_vm9, %v574_v40, %v576_v52  ;;  %v63_v4 = vmul.f32 %v3019_v21, %v3258_v0  ;;  %v580_v63 = vshrl.u32 %v3256_v41, 16  ;;  %v97_v8 = vrot.slane %v81_v19, 1 }
  0xd6   :  { %v3267_v42 = vsub.s32 %v474_v17, %v477_v13  ;;  %v581_v2 = vand.u32 65535, %v577_v6  ;;  %v582_v53 = vshrl.u32 %v577_v6, 16  ;;  %v331_v59 = vsel %vm2807_vm11, 0, %v2806_v39 }
  0xd7   :  { %v606_v17 = vmul.u32 %v604_v54, %v579_v51  ;;  %v131_v23 = vmul.f32 %v3008_v12, %v3258_v0  ;;  %v113_v29 = vadd.f32 %v97_v8, %v63_v4  ;;  %v603_v30 = vand.u32 65535, %v573_v48 }
  0xd8   :  { %vm479_vm10 = vcmp.lt.s32.totalorder %v3267_v42, 0  ;;  %v480_v50 = vsub.s32 0, %v3267_v42  ;;  %v584_v58 = vmul.u32 %v582_v53, %v579_v51  ;;  %v585_v15 = vmul.u32 %v581_v2, %v580_v63 }
  0xd9   :  { %v583_v18 = vmul.u32 %v581_v2, %v579_v51  ;;  %v336_v32 = vsub.s32 4294967266, %v331_v59  ;;  %v586_v21 = vmul.u32 %v582_v53, %v580_v63  ;;  %v609_v13 = vshll.u32 %v606_v17, 16 }
  0xda   :  { %v481_v56 = vsel %vm479_vm10, %v480_v50, %v3267_v42  ;;  %v587_v3 = vshll.u32 %v584_v58, 16  ;;  %v589_v35 = vshll.u32 %v585_v15, 16  ;;  %v147_v39 = vrot.slane %v131_v23, 2 }
  0xdb   :  { %v482_v57 = vclz %v481_v56  ;;  %v181_v40 = vmul.f32 %v3017_v20, %v3258_v0  ;;  %v605_v12 = vmul.u32 %v603_v30, %v579_v51  ;;  %v607_v52 = vmul.u32 %v603_v30, %v580_v63 }
  0xdc   :  { %vm591_vm12 = vc.u32 %v583_v18, %v587_v3  ;;  %v593_v34 = vadd.s32 %v587_v3, %v583_v18  ;;  %v337_v6 = vadd.s32 127, %v336_v32  ;;  %v163_v50 = vadd.f32 %v147_v39, %v113_v29 }
  0xdd   :  { %v2809_v27 = vadd.s32 4294967294, %v482_v57  ;;  %v592_v37 = vsel %vm591_vm12, 1, %v2971_v5  ;;  %v608_v53 = vmul.u32 %v604_v54, %v580_v63  ;;  %vm613_vm15 = vc.u32 %v605_v12, %v609_v13 }
  0xde   :  { %v594_v36 = vadd.s32 %v592_v37, %v586_v21  ;;  %vm595_vm14 = vc.u32 %v593_v34, %v589_v35  ;;  %v197_v4 = vrot.slane %v181_v40, 3  ;;  %v332_v56 = vsub.s32 32, %v331_v59 }
  0xdf   :  { %vm2810_vm13 = vcmp.lt.s32.totalorder %v2809_v27, 0  ;;  %v596_v48 = vsel %vm595_vm14, 1, %v2971_v5  ;;  %v588_v57 = vshrl.u32 %v584_v58, 16  ;;  %v614_v8 = vsel %vm613_vm15, 1, %v2971_v5 }
  0xe0   :  { %v485_v19 = vsel %vm2810_vm13, 0, %v2809_v27  ;;  %v598_v2 = vadd.s32 %v596_v48, %v594_v36  ;;  %v611_v18 = vshll.u32 %v607_v52, 16  ;;  %v615_v20 = vadd.s32 %v609_v13, %v605_v12 }
  0xe1   :  { %v490_v23 = vsub.s32 4294967266, %v485_v19  ;;  %v616_v3 = vadd.s32 %v614_v8, %v608_v53  ;;  %v316_v51 = vadd.s32 %v3138_v60, %v3149_v26  ;;  %v338_v30 = vshll.u32 %v337_v6, 23 }
  0xe2   :  { %v599_v27 = vadd.s32 %v598_v2, %v588_v57  ;;  %v3293_v32 = vadd.f32 %v197_v4, %v163_v50  ;;  %v567_v54 = vsel %vm565_vm6, %v3238_v24, 2102212464  ;;  %vm617_vm0 = vc.u32 %v615_v20, %v611_v18 }
  0xe3   :  { %v334_v63 = vshrl.u32 %v316_v51, %v332_v56  ;;  %v546_v58 = vshrl.u32 %v4463_v14, %v3200_v43  ;;  %v590_v29 = vshrl.u32 %v585_v15, 16  ;;  %v618_v21 = vsel %vm617_vm0, 1, %v2971_v5 }
  0xe4   :  { %v333_v34 = vshll.u32 %v3192_v62, %v331_v59  ;;  %v491_v35 = vadd.s32 127, %v490_v23  ;;  %v610_v60 = vshrl.u32 %v606_v17, 16  ;;  %v620_v26 = vadd.s32 %v618_v21, %v616_v3 }
  0xe5   :  { %v339_v37 = vor.u32 4788187, %v338_v30  ;;  %v566_v13 = vsel %vm562_vm7, %v546_v58, %v3232_v1  ;;  %v568_v24 = vsel %vm564_vm8, %v3236_v11, %v567_v54  ;;  %v3308_v39 = vadd.s32 %v599_v27, %v590_v29 }
  0xe6   :  { %v486_v43 = vsub.s32 32, %v485_v19  ;;  %v612_v15 = vshrl.u32 %v607_v52, 16  ;;  %v621_v40 = vadd.s32 %v620_v26, %v610_v60  ;;  %v687_v36 = vand.u32 2139095040, %v3293_v32 }
  0xe7   :  { %v335_v62 = vor.u32 %v334_v63, %v333_v34  ;;  %v470_v59 = vadd.s32 %v3206_v7, %v3204_v10  ;;  %v3313_v17 = vadd.s32 %v615_v20, %v611_v18  ;;  %v492_v12 = vshll.u32 %v491_v35, 23 }
  0xe8   :  { %v569_v1 = vsel %vm563_vm9, %v566_v13, %v568_v24  ;;  %v622_v6 = vadd.s32 %v621_v40, %v612_v15  ;;  %v688_v48 = vshrl.u32 %v687_v36, 23  ;;  %v340_v11 = vand.u32 2147483647, %v339_v37  ;;  %v75_v37 = vpop.permute.xlu2 %74 }
  0xe9   :  { %vm625_vm1 = vc.u32 %v3308_v39, %v3313_v17  ;;  %v488_v52 = vshrl.u32 %v470_v59, %v486_v43  ;;  %v342_v53 = vcvt.s32.f32 %v335_v62  ;;  %v623_v4 = vmul.u32 %v3256_v41, %v569_v1 }
  0xea   :  { %v626_v50 = vadd.s32 1, %v622_v6  ;;  %v2814_v2 = vadd.s32 4294967169, %v688_v48  ;;  %v487_v10 = vshll.u32 %v3267_v42, %v485_v19  ;;  %v493_v7 = vor.u32 4788187, %v492_v12 }
  0xeb   :  { %v343_v8 = vmul.f32 %v342_v53, %v340_v11  ;;  %v4445_v51 = vand.u32 2147483647, %v3293_v32  ;;  %vm224_vm3 = vcmp.lt.s32.totalorder %v3030_v44, 0  ;;  %vm3338_vm4 = vcmp.le.f32.partialorder %v222_v47, 0.7853982 }
  0xec   :  { %v627_v56 = vsel %vm625_vm1, %v626_v50, %v622_v6  ;;  %v694_v57 = vadd.s32 1, %v2814_v2  ;;  %v489_v23 = vor.u32 %v488_v52, %v487_v10  ;;  %v494_v3 = vand.u32 2147483647, %v493_v7 }
  0xed   :  { %v628_v55 = vadd.s32 %v627_v56, %v623_v4  ;;  %v344_v27 = vxor.u32 2147483648, %v343_v8  ;;  %v691_v58 = vand.u32 8388607, %v4445_v51  ;;  %v3369_v2 = vperm.slane %v75_v37, 0 }
  0xee   :  { %vm695_vm2 = vcmp.gt.s32.totalorder %v694_v57, 0  ;;  %v496_v63 = vcvt.s32.f32 %v489_v23  ;;  %vm378_vm6 = vcmp.lt.s32.totalorder %v3032_v45, 0  ;;  %vm3386_vm9 = vcmp.le.f32.partialorder %v376_v49, 0.7853982 }
  0xef   :  { %v629_v18 = vadd.s32 536870912, %v628_v55  ;;  %v696_v20 = vsel %vm695_vm2, %v694_v57, 0  ;;  %v345_v29 = vsel %vm224_vm3, %v344_v27, %v343_v8  ;;  %v692_v43 = vor.u32 8388608, %v691_v58 }
  0xf0   :  { %v698_v30 = vand.u32 31, %v696_v20  ;;  %v497_v19 = vmul.f32 %v496_v63, %v494_v3  ;;  %v3349_v13 = vsel %vm3338_vm4, %v3030_v44, %v345_v29  ;;  %v3353_v40 = vshrl.u32 %v696_v20, 5 }
  0xf1   :  { %v3322_v54 = vshrl.u32 %v629_v18, 30  ;;  %v3373_v53 = vmul.f32 %v3349_v13, %v3349_v13  ;;  %v3382_v57 = vshll.u32 %v692_v43, 8  ;;  %v3398_v20 = vmul.f32 %v3369_v2, %v3006_v9 }
  0xf2   :  { %v3324_v41 = vsub.s32 32, %v698_v30  ;;  %v498_v24 = vxor.u32 2147483648, %v497_v19  ;;  %v701_v47 = vshll.u32 %v4463_v14, %v698_v30  ;;  %v704_v36 = vshll.u32 %v4461_v16, %v698_v30 }
  0xf3   :  { %v631_v42 = vshll.u32 %v3322_v54, 30  ;;  %v707_v12 = vshll.u32 %v4457_v22, %v698_v30  ;;  %v710_v1 = vshll.u32 %v4455_v25, %v698_v30  ;;  %v713_v52 = vshll.u32 %v4453_v28, %v698_v30 }
  0xf4   :  { %v702_v34 = vshrl.u32 %v4461_v16, %v3324_v41  ;;  %v705_v26 = vshrl.u32 %v4457_v22, %v3324_v41  ;;  %v708_v62 = vshrl.u32 %v4455_v25, %v3324_v41  ;;  %v711_v6 = vshrl.u32 %v4453_v28, %v3324_v41 }
  0xf5   :  { %v3332_v21 = vsub.s32 %v628_v55, %v631_v42  ;;  %v714_v50 = vshrl.u32 %v4446_v31, %v3324_v41  ;;  %v499_v10 = vsel %vm378_vm6, %v498_v24, %v497_v19  ;;  %vm716_vm7 = vcmp.lt.s32.totalorder %v3353_v40, 1  ;;  %v57_v42 = vpop.permute.xlu2 %56 }
  0xf6   :  { %v3358_v59 = vor.u32 %v702_v34, %v701_v47  ;;  %v3364_v11 = vor.u32 %v705_v26, %v704_v36  ;;  %v712_v4 = vor.u32 %v711_v6, %v710_v1  ;;  %v3378_v7 = vor.u32 %v708_v62, %v707_v12  ;;  %v125_v1 = vpop.permute.xlu1 %124 }
  0xf7   :  { %vm633_vm5 = vcmp.lt.s32.totalorder %v3332_v21, 0  ;;  %v634_v60 = vsub.s32 0, %v3332_v21  ;;  %v715_v56 = vor.u32 %v714_v50, %v713_v52  ;;  %vm719_vm8 = vcmp.lt.s32.totalorder %v3353_v40, 4 }
  0xf8   :  { %v724_v23 = vsel %vm716_vm7, %v3358_v59, %v3364_v11  ;;  %v725_v18 = vsel %vm719_vm8, %v712_v4, 920167782  ;;  %v351_v3 = vmul.f32 -0.001358992, %v3373_v53  ;;  %v3404_v49 = vsel %vm3386_vm9, %v3032_v45, %v499_v10 }
  0xf9   :  { %v635_v15 = vsel %vm633_vm5, %v634_v60, %v3332_v21  ;;  %vm718_vm10 = vcmp.lt.s32.totalorder %v3353_v40, 3  ;;  %vm717_vm11 = vcmp.lt.s32.totalorder %v3353_v40, 2  ;;  %v728_v27 = vsel %vm716_vm7, %v3364_v11, %v3378_v7 }
  0xfa   :  { %v636_v48 = vclz %v635_v15  ;;  %v726_v30 = vsel %vm718_vm10, %v3378_v7, %v725_v18  ;;  %v729_v63 = vsel %vm719_vm8, %v715_v56, 1326507024  ;;  %v358_v19 = vmul.f32 -0.00019511016, %v3373_v53 }
  0xfb   :  { %v727_v58 = vsel %vm717_vm11, %v724_v23, %v726_v30  ;;  %v730_v29 = vsel %vm718_vm10, %v712_v4, %v729_v63  ;;  %v733_v34 = vand.u32 65535, %v3382_v57  ;;  %v3427_v24 = vmul.f32 %v3404_v49, %v3404_v49 }
  0xfc   :  { %v2812_v55 = vadd.s32 4294967294, %v636_v48  ;;  %v731_v60 = vsel %vm717_vm11, %v728_v27, %v730_v29  ;;  %v757_v26 = vand.u32 65535, %v727_v58  ;;  %v758_v37 = vshrl.u32 %v727_v58, 16 }
  0xfd   :  { %v735_v43 = vand.u32 65535, %v731_v60  ;;  %v736_v47 = vshrl.u32 %v731_v60, 16  ;;  %v98_v15 = vrot.slane %v3398_v20, 1  ;;  %v3430_v36 = vperm.slane %v57_v42, 0  ;;  %v2879_v20 = vld [vmem:[#allocation5] sm:$0x1f] }
  0xfe   :  { %vm2813_vm12 = vcmp.lt.s32.totalorder %v2812_v55, 0  ;;  %v734_v62 = vshrl.u32 %v3382_v57, 16  ;;  %v760_v12 = vmul.u32 %v758_v37, %v733_v34  ;;  %v352_v6 = vadd.f32 0.041655596, %v351_v3 }
  0xff   :  { %v359_v48 = vadd.f32 0.008332121, %v358_v19  ;;  %v3433_v52 = vsel %vm2813_vm12, 0, %v2812_v55  ;;  %v738_v50 = vmul.u32 %v736_v47, %v733_v34  ;;  %v759_v10 = vmul.u32 %v757_v26, %v733_v34 }
 0x100   :  { %v739_v4 = vmul.u32 %v735_v43, %v734_v62  ;;  %v761_v56 = vmul.u32 %v757_v26, %v734_v62  ;;  %v763_v23 = vshll.u32 %v760_v12, 16  ;;  %v512_v18 = vmul.f32 -0.00019511016, %v3427_v24 }
 0x101   :  { %v737_v30 = vmul.u32 %v735_v43, %v733_v34  ;;  %v741_v27 = vshll.u32 %v738_v50, 16  ;;  %v3436_v63 = vperm.slane %v125_v1, 0  ;;  %v644_v42 = vsub.s32 4294967266, %v3433_v52 }
 0x102   :  { %v740_v58 = vmul.u32 %v736_v47, %v734_v62  ;;  %v762_v29 = vmul.u32 %v758_v37, %v734_v62  ;;  %vm767_vm13 = vc.u32 %v759_v10, %v763_v23  ;;  %v743_v3 = vshll.u32 %v739_v4, 16 }
 0x103   :  { %vm745_vm14 = vc.u32 %v737_v30, %v741_v27  ;;  %v747_v55 = vadd.s32 %v741_v27, %v737_v30  ;;  %v768_v19 = vsel %vm767_vm13, 1, %v2971_v5  ;;  %v765_v26 = vshll.u32 %v761_v56, 16 }
 0x104   :  { %v746_v60 = vsel %vm745_vm14, 1, %v2971_v5  ;;  %v769_v51 = vadd.s32 %v763_v23, %v759_v10  ;;  %v770_v31 = vadd.s32 %v768_v19, %v762_v29  ;;  %v360_v34 = vmul.f32 %v359_v48, %v3373_v53 }
 0x105   :  { %v748_v43 = vadd.s32 %v746_v60, %v740_v58  ;;  %vm749_vm15 = vc.u32 %v747_v55, %v743_v3  ;;  %v132_v1 = vmul.f32 %v3436_v63, %v3006_v9  ;;  %v513_v47 = vadd.f32 0.008332121, %v512_v18 }
 0x106   :  { %v721_v37 = vsel %vm719_vm8, %v3378_v7, 2102212464  ;;  %v750_v62 = vsel %vm749_vm15, 1, %v2971_v5  ;;  %vm771_vm0 = vc.u32 %v769_v51, %v765_v26  ;;  %v700_v30 = vshrl.u32 %v4463_v14, %v3324_v41 }
 0x107   :  { %v742_v10 = vshrl.u32 %v738_v50, 16  ;;  %v752_v23 = vadd.s32 %v750_v62, %v748_v43  ;;  %v772_v48 = vsel %vm771_vm0, 1, %v2971_v5  ;;  %v505_v27 = vmul.f32 -0.001358992, %v3427_v24 }
 0x108   :  { %v645_v58 = vadd.s32 127, %v644_v42  ;;  %v764_v29 = vshrl.u32 %v760_v12, 16  ;;  %v774_v3 = vadd.s32 %v772_v48, %v770_v31  ;;  %v720_v18 = vsel %vm716_vm7, %v700_v30, %v3358_v59 }
 0x109   :  { %v722_v7 = vsel %vm718_vm10, %v3364_v11, %v721_v37  ;;  %v744_v55 = vshrl.u32 %v739_v4, 16  ;;  %v753_v19 = vadd.s32 %v752_v23, %v742_v10  ;;  %v514_v41 = vmul.f32 %v513_v47, %v3427_v24  ;;  %v175_v37 = vpop.permute.xlu2 %174 }
 0x10a   :  { %v640_v50 = vsub.s32 32, %v3433_v52  ;;  %v766_v60 = vshrl.u32 %v761_v56, 16  ;;  %v775_v43 = vadd.s32 %v774_v3, %v764_v29  ;;  %v64_v12 = vmul.f32 %v3430_v36, %v3006_v9 }
 0x10b   :  { %v361_v31 = vadd.f32 -0.16666654, %v360_v34  ;;  %v3462_v42 = vadd.s32 %v753_v19, %v744_v55  ;;  %v3464_v62 = vadd.s32 %v769_v51, %v765_v26  ;;  %v624_v59 = vadd.s32 %v3313_v17, %v3308_v39  ;;  %v2880_v55 = vld [vmem:[#allocation5 + $0x8] sm:$0x1f] }
 0x10c   :  { %v646_v11 = vshll.u32 %v645_v58, 23  ;;  %v723_v4 = vsel %vm717_vm11, %v720_v18, %v722_v7  ;;  %v776_v47 = vadd.s32 %v775_v43, %v766_v60  ;;  %v506_v30 = vadd.f32 0.041655596, %v505_v27 }
 0x10d   :  { %vm779_vm1 = vc.u32 %v3462_v42, %v3464_v62  ;;  %v148_v56 = vrot.slane %v132_v1, 2  ;;  %v353_v9 = vmul.f32 %v352_v6, %v3373_v53  ;;  %v515_v34 = vadd.f32 -0.16666654, %v514_v41 }
 0x10e   :  { %v642_v10 = vshrl.u32 %v624_v59, %v640_v50  ;;  %v780_v51 = vadd.s32 1, %v776_v47  ;;  %v114_v26 = vadd.f32 %v98_v15, %v64_v12  ;;  %v346_v39 = vsub.s32 4, %v3178_v61 }
 0x10f   :  { %v777_v17 = vmul.u32 %v3382_v57, %v723_v4  ;;  %v3477_v40 = vperm.slane %v175_v37, 0  ;;  %v362_v23 = vmul.f32 %v361_v31, %v3373_v53  ;;  %v641_v48 = vshll.u32 %v3332_v21, %v3433_v52  ;;  %v3489_v21 = vld [vmem:[#allocation5 + $0x10] sm:$0x1f] }
 0x110   :  { %v647_v1 = vor.u32 4788187, %v646_v11  ;;  %v781_v27 = vsel %vm779_vm1, %v780_v51, %v776_v47  ;;  %v507_v6 = vmul.f32 %v506_v30, %v3427_v24  ;;  %v164_v29 = vadd.f32 %v148_v56, %v114_v26 }
 0x111   :  { %v3483_v58 = vadd.s32 %v781_v27, %v777_v17  ;;  %v182_v15 = vmul.f32 %v2879_v20, %v3477_v40  ;;  %v354_v3 = vadd.f32 -0.4999988, %v353_v9  ;;  %v500_v57 = vsub.s32 4, %v3242_v33 }
 0x112   :  { %v516_v18 = vmul.f32 %v515_v34, %v3427_v24  ;;  %v643_v7 = vor.u32 %v642_v10, %v641_v48  ;;  %v83_v19 = vmul.f32 %v2880_v55, %v3369_v2  ;;  %v3493_v52 = vmul.f32 %v3489_v21, %v3369_v2 }
 0x113   :  { %v198_v41 = vrot.slane %v182_v15, 3  ;;  %v3497_v50 = vmul.f32 %v3369_v2, %v3258_v0  ;;  %v648_v60 = vand.u32 2147483647, %v647_v1  ;;  %v783_v43 = vadd.s32 536870912, %v3483_v58 }
 0x114   :  { %v347_v12 = vsel %vm224_vm3, %v346_v39, %v3178_v61  ;;  %v363_v31 = vadd.f32 1.0, %v362_v23  ;;  %v508_v59 = vadd.f32 -0.4999988, %v507_v6  ;;  %v355_v4 = vmul.f32 %v354_v3, %v3373_v53 }
 0x115   :  { %v3503_v11 = vadd.f32 %v198_v41, %v164_v29  ;;  %v501_v47 = vsel %vm378_vm6, %v500_v57, %v3242_v33  ;;  %v517_v37 = vadd.f32 1.0, %v516_v18  ;;  %v650_v2 = vcvt.s32.f32 %v643_v7 }
 0x116   :  { %v99_v30 = vrot.slane %v83_v19, 1  ;;  %v100_v56 = vrot.slane %v3493_v52, 1  ;;  %v65_v9 = vmul.f32 %v2880_v55, %v3430_v36  ;;  %v3513_v61 = vsel %vm3338_vm4, 0, %v347_v12 }
 0x117   :  { %v651_v34 = vmul.f32 %v650_v2, %v648_v60  ;;  %v3515_v10 = vshrl.u32 %v783_v43, 30  ;;  %v841_v53 = vand.u32 2139095040, %v3503_v11  ;;  %v101_v51 = vrot.slane %v3497_v50, 1 }
 0x118   :  { %v3520_v33 = vmul.f32 %v363_v31, %v3349_v13  ;;  %v3524_v26 = vsel %vm3386_vm9, 0, %v501_v47  ;;  %v509_v39 = vmul.f32 %v508_v59, %v3427_v24  ;;  %v66_v35 = vmul.f32 %v3489_v21, %v3430_v36 }
 0x119   :  { %v3529_v17 = vadd.f32 1.0, %v355_v4  ;;  %v3532_v23 = vmul.f32 %v517_v37, %v3404_v49  ;;  %v842_v48 = vshrl.u32 %v841_v53, 23  ;;  %v67_v1 = vmul.f32 %v3430_v36, %v3258_v0 }
 0x11a   :  { %v115_v13 = vadd.f32 %v99_v30, %v65_v9  ;;  %v366_v27 = vand.u32 3, %v3513_v61  ;;  %v133_v8 = vmul.f32 %v2880_v55, %v3436_v63  ;;  %v520_v6 = vand.u32 3, %v3524_v26 }
 0x11b   :  { %v652_v24 = vxor.u32 2147483648, %v651_v34  ;;  %v785_v29 = vshll.u32 %v3515_v10, 30  ;;  %v2817_v20 = vadd.s32 4294967169, %v842_v48  ;;  %v4452_v15 = vxor.u32 2147483648, %v3520_v33 }
 0x11c   :  { %v3541_v3 = vadd.f32 1.0, %v509_v39  ;;  %vm3545_vm2 = vcmp.le.f32.partialorder %v530_v38, 0.7853982  ;;  %vm532_vm3 = vcmp.lt.s32.totalorder %v3034_v46, 0  ;;  %v4451_v36 = vxor.u32 2147483648, %v3529_v17 }
 0x11d   :  { %v4449_v57 = vxor.u32 2147483648, %v3532_v23  ;;  %v654_v18 = vsub.s32 4, %v3322_v54  ;;  %v848_v7 = vadd.s32 1, %v2817_v20  ;;  %vm367_vm4 = vcmp.lt.s32.totalorder %v366_v27, 2 }
 0x11e   :  { %vm368_vm5 = vcmp.eq.s32.totalorder %v366_v27, 0  ;;  %v149_v19 = vrot.slane %v133_v8, 2  ;;  %v183_v52 = vmul.f32 %v2880_v55, %v3477_v40  ;;  %vm371_vm6 = vcmp.eq.s32.totalorder %v366_v27, 2 }
 0x11f   :  { %vm521_vm7 = vcmp.lt.s32.totalorder %v520_v6, 2  ;;  %v653_v38 = vsel %vm532_vm3, %v652_v24, %v651_v34  ;;  %v3557_v41 = vsub.s32 %v3483_v58, %v785_v29  ;;  %v370_v50 = vsel %vm368_vm5, %v3529_v17, %v4452_v15 }
 0x120   :  { %vm522_vm8 = vcmp.eq.s32.totalorder %v520_v6, 0  ;;  %v4450_v60 = vxor.u32 2147483648, %v3541_v3  ;;  %vm849_vm9 = vcmp.gt.s32.totalorder %v848_v7, 0  ;;  %v373_v55 = vsel %vm371_vm6, %v4451_v36, %v3520_v33 }
 0x121   :  { %v524_v43 = vsel %vm522_vm8, %v3541_v3, %v4449_v57  ;;  %v655_v58 = vsel %vm532_vm3, %v654_v18, %v3322_v54  ;;  %v850_v12 = vsel %vm849_vm9, %v848_v7, 0  ;;  %v3575_v31 = vsel %vm3545_vm2, %v3034_v46, %v653_v38 }
 0x122   :  { %v165_v59 = vadd.f32 %v149_v19, %v115_v13  ;;  %v199_v4 = vrot.slane %v183_v52, 3  ;;  %v4448_v47 = vand.u32 2147483647, %v3503_v11  ;;  %v374_v37 = vsel %vm367_vm4, %v370_v50, %v373_v55 }
 0x123   :  { %vm525_vm10 = vcmp.eq.s32.totalorder %v520_v6, 2  ;;  %v788_v2 = vsub.s32 0, %v3557_v41  ;;  %v852_v30 = vand.u32 31, %v850_v12  ;;  %vm787_vm11 = vcmp.lt.s32.totalorder %v3557_v41, 0 }
 0x124   :  { %v527_v54 = vsel %vm525_vm10, %v4450_v60, %v3532_v23  ;;  %v3586_v9 = vmul.f32 %v3489_v21, %v3436_v63  ;;  %v3590_v34 = vmul.f32 %v3436_v63, %v3258_v0  ;;  %v3592_v53 = vadd.f32 %v100_v56, %v66_v35 }
 0x125   :  { %v528_v39 = vsel %vm521_vm7, %v524_v43, %v527_v54  ;;  %v657_v48 = vsel %vm3545_vm2, 0, %v655_v58  ;;  %v3599_v13 = vmul.f32 %v3575_v31, %v3575_v31  ;;  %v3601_v27 = vadd.f32 %v101_v51, %v67_v1 }
 0x126   :  { %vm365_vm12 = vweird.f32 %v3030_v44  ;;  %v3604_v8 = vadd.f32 %v199_v4, %v165_v59  ;;  %v845_v63 = vand.u32 8388607, %v4448_v47  ;;  %vm4468_vm13 = vweird.f32 %v3032_v45 }
 0x127   :  { %v3610_v56 = vsel %vm365_vm12, nan, %v374_v37  ;;  %v789_v35 = vsel %vm787_vm11, %v788_v2, %v3557_v41  ;;  %v3614_v6 = vsub.s32 32, %v852_v30  ;;  %v3618_v51 = vsel %vm4468_vm13, nan, %v528_v39 }
 0x128   :  { %4480 = vst [vmem:[#allocation11_spill] sm:$0xff] %v3618_v51  ;;  %v3620_v1 = vand.u32 3, %v657_v48  ;;  %v150_v24 = vrot.slane %v3586_v9, 2  ;;  %v151_v29 = vrot.slane %v3590_v34, 2  ;;  %v659_v20 = vmul.f32 -0.001358992, %v3599_v13 }
 0x129   :  { %v666_v49 = vmul.f32 -0.00019511016, %v3599_v13  ;;  %v1598_v18 = vadd.s32 3, %v3513_v61  ;;  %v3628_v7 = vadd.s32 3, %v3524_v26  ;;  %v790_v19 = vclz %v789_v35 }
 0x12a   :  { %v846_v52 = vor.u32 8388608, %v845_v63  ;;  %v3630_v38 = vshrl.u32 %v850_v12, 5  ;;  %v995_v50 = vand.u32 2139095040, %v3604_v8  ;;  %v855_v55 = vshll.u32 %v4463_v14, %v852_v30 }
 0x12b   :  { %v856_v43 = vshrl.u32 %v4461_v16, %v3614_v6  ;;  %v858_v58 = vshll.u32 %v4461_v16, %v852_v30  ;;  %v859_v59 = vshrl.u32 %v4457_v22, %v3614_v6  ;;  %v861_v61 = vshll.u32 %v4457_v22, %v852_v30 }
 0x12c   :  { %v862_v26 = vshrl.u32 %v4455_v25, %v3614_v6  ;;  %v864_v12 = vshll.u32 %v4455_v25, %v852_v30  ;;  %v865_v4 = vshrl.u32 %v4453_v28, %v3614_v6  ;;  %v867_v54 = vshll.u32 %v4453_v28, %v852_v30 }
 0x12d   :  { %v3645_v37 = vor.u32 %v856_v43, %v855_v55  ;;  %v3647_v2 = vor.u32 %v859_v59, %v858_v58  ;;  %v4481_v9 = vmov 1326507024   ;;  %v660_v39 = vadd.f32 0.041655596, %v659_v20 }
 0x12e   :  { %v868_v34 = vshrl.u32 %v4481_v9, %v3614_v6  ;;  %v667_v63 = vadd.f32 0.008332121, %v666_v49  ;;  %v863_v35 = vor.u32 %v862_v26, %v861_v61  ;;  %v866_v47 = vor.u32 %v865_v4, %v864_v12 }
 0x12f   :  { %vm870_vm14 = vcmp.lt.s32.totalorder %v3630_v38, 1  ;;  %vm873_vm15 = vcmp.lt.s32.totalorder %v3630_v38, 4  ;;  %v3654_v60 = vshll.u32 %v846_v52, 8  ;;  %v2815_v55 = vadd.s32 4294967294, %v790_v19 }
 0x130   :  { %v869_v57 = vor.u32 %v868_v34, %v867_v54  ;;  %vm872_vm0 = vcmp.lt.s32.totalorder %v3630_v38, 3  ;;  %v878_v30 = vsel %vm870_vm14, %v3645_v37, %v3647_v2  ;;  %v879_v20 = vsel %vm873_vm15, %v866_v47, 920167782 }
 0x131   :  { %vm871_vm1 = vcmp.lt.s32.totalorder %v3630_v38, 2  ;;  %v880_v49 = vsel %vm872_vm0, %v863_v35, %v879_v20  ;;  %v882_v52 = vsel %vm870_vm14, %v3647_v2, %v863_v35  ;;  %v996_v19 = vshrl.u32 %v995_v50, 23 }
 0x132   :  { %v668_v43 = vmul.f32 %v667_v63, %v3599_v13  ;;  %v3670_v58 = vand.u32 3, %v1598_v18  ;;  %v881_v59 = vsel %vm871_vm1, %v878_v30, %v880_v49  ;;  %v883_v61 = vsel %vm873_vm15, %v869_v57, 1326507024 }
 0x133   :  { %v661_v26 = vmul.f32 %v660_v39, %v3599_v13  ;;  %v3677_v12 = vadd.s32 3, %v657_v48  ;;  %v884_v4 = vsel %vm872_vm0, %v866_v47, %v883_v61  ;;  %v912_v54 = vshrl.u32 %v881_v59, 16 }
 0x134   :  { %vm2816_vm2 = vcmp.lt.s32.totalorder %v2815_v55, 0  ;;  %v885_v50 = vsel %vm871_vm1, %v882_v52, %v884_v4  ;;  %v887_v18 = vand.u32 65535, %v3654_v60  ;;  %v911_v34 = vand.u32 65535, %v881_v59 }
 0x135   :  { %v3685_v63 = vadd.f32 %v150_v24, %v3592_v53  ;;  %v889_v30 = vand.u32 65535, %v885_v50  ;;  %v890_v57 = vshrl.u32 %v885_v50, 16  ;;  %v2820_v20 = vadd.s32 4294967169, %v996_v19 }
 0x136   :  { %v669_v39 = vadd.f32 -0.16666654, %v668_v43  ;;  %v778_v48 = vadd.s32 %v3464_v62, %v3462_v42  ;;  %v888_v47 = vshrl.u32 %v3654_v60, 16  ;;  %v914_v49 = vmul.u32 %v912_v54, %v887_v18 }
 0x137   :  { %v662_v61 = vadd.f32 -0.4999988, %v661_v26  ;;  %v3690_v36 = vsel %vm2816_vm2, 0, %v2815_v55  ;;  %v3693_v52 = vadd.f32 %v151_v29, %v3601_v27  ;;  %v892_v59 = vmul.u32 %v890_v57, %v887_v18 }
 0x138   :  { %v3697_v53 = vmul.f32 %v3489_v21, %v3477_v40  ;;  %v893_v24 = vmul.u32 %v889_v30, %v888_v47  ;;  %v915_v19 = vmul.u32 %v911_v34, %v888_v47  ;;  %v917_v43 = vshll.u32 %v914_v49, 16 }
 0x139   :  { %v3701_v42 = vmul.f32 %v3477_v40, %v3258_v0  ;;  %v891_v62 = vmul.u32 %v889_v30, %v887_v18  ;;  %v895_v4 = vshll.u32 %v892_v59, 16  ;;  %v1002_v26 = vadd.s32 1, %v2820_v20 }
 0x13a   :  { %v670_v55 = vmul.f32 %v669_v39, %v3599_v13  ;;  %v798_v27 = vsub.s32 4294967266, %v3690_v36  ;;  %v875_v29 = vsel %vm873_vm15, %v863_v35, 2102212464  ;;  %v913_v50 = vmul.u32 %v911_v34, %v887_v18 }
 0x13b   :  { %v894_v21 = vmul.u32 %v890_v57, %v888_v47  ;;  %v897_v15 = vshll.u32 %v893_v24, 16  ;;  %vm899_vm3 = vc.u32 %v891_v62, %v895_v4  ;;  %v901_v28 = vadd.s32 %v895_v4, %v891_v62 }
 0x13c   :  { %v900_v25 = vsel %vm899_vm3, 1, %v2971_v5  ;;  %v919_v22 = vshll.u32 %v915_v19, 16  ;;  %vm921_vm4 = vc.u32 %v913_v50, %v917_v43  ;;  %v923_v0 = vadd.s32 %v917_v43, %v913_v50 }
 0x13d   :  { %v902_v40 = vadd.s32 %v900_v25, %v894_v21  ;;  %vm903_vm5 = vc.u32 %v901_v28, %v897_v15  ;;  %v916_v30 = vmul.u32 %v912_v54, %v888_v47  ;;  %vm1003_vm6 = vcmp.gt.s32.totalorder %v1002_v26, 0 }
 0x13e   :  { %v854_v20 = vshrl.u32 %v4463_v14, %v3614_v6  ;;  %v904_v39 = vsel %vm903_vm5, 1, %v2971_v5  ;;  %v922_v35 = vsel %vm921_vm4, 1, %v2971_v5  ;;  %vm925_vm7 = vc.u32 %v923_v0, %v919_v22 }
 0x13f   :  { %v896_v18 = vshrl.u32 %v892_v59, 16  ;;  %v906_v34 = vadd.s32 %v904_v39, %v902_v40  ;;  %v924_v57 = vadd.s32 %v922_v35, %v916_v30  ;;  %v4459_v62 = vand.u32 2147483647, %v3604_v8 }
 0x140   :  { %v874_v25 = vsel %vm870_vm14, %v854_v20, %v3645_v37  ;;  %v876_v28 = vsel %vm872_vm0, %v3647_v2, %v875_v29  ;;  %v926_v15 = vsel %vm925_vm7, 1, %v2971_v5  ;;  %v1004_v6 = vsel %vm1003_vm6, %v1002_v26, 0 }
 0x141   :  { %v794_v54 = vsub.s32 32, %v3690_v36  ;;  %v898_v47 = vshrl.u32 %v893_v24, 16  ;;  %v907_v43 = vadd.s32 %v906_v34, %v896_v18  ;;  %v928_v59 = vadd.s32 %v926_v15, %v924_v57 }
 0x142   :  { %v663_v4 = vmul.f32 %v662_v61, %v3599_v13  ;;  %v799_v50 = vadd.s32 127, %v798_v27  ;;  %v918_v21 = vshrl.u32 %v914_v49, 16  ;;  %v1006_v40 = vand.u32 31, %v1004_v6 }
 0x143   :  { %v200_v30 = vrot.slane %v3697_v53, 3  ;;  %v201_v37 = vrot.slane %v3701_v42, 3  ;;  %v877_v2 = vsel %vm871_vm1, %v874_v25, %v876_v28  ;;  %v3726_v29 = vadd.s32 %v907_v43, %v898_v47 }
 0x144   :  { %v920_v26 = vshrl.u32 %v915_v19, 16  ;;  %v929_v20 = vadd.s32 %v928_v59, %v918_v21  ;;  %v999_v24 = vand.u32 8388607, %v4459_v62  ;;  %v3730_v39 = vsub.s32 32, %v1006_v40 }
 0x145   :  { %v671_v13 = vadd.f32 1.0, %v670_v55  ;;  %v795_v49 = vshll.u32 %v3557_v41, %v3690_v36  ;;  %v796_v61 = vshrl.u32 %v778_v48, %v794_v54  ;;  %v3734_v27 = vadd.s32 %v923_v0, %v919_v22 }
 0x146   :  { %v800_v35 = vshll.u32 %v799_v50, 23  ;;  %v930_v18 = vadd.s32 %v929_v20, %v920_v26  ;;  %v931_v38 = vmul.u32 %v3654_v60, %v877_v2  ;;  %v1009_v34 = vshll.u32 %v4463_v14, %v1006_v40 }
 0x147   :  { %vm933_vm8 = vc.u32 %v3726_v29, %v3734_v27  ;;  %v1010_v19 = vshrl.u32 %v4461_v16, %v3730_v39  ;;  %v1012_v55 = vshll.u32 %v4461_v16, %v1006_v40  ;;  %v4482_v57 = vmov 2131351028  }
 0x148   :  { %v1013_v36 = vshrl.u32 %v4482_v57, %v3730_v39  ;;  %v934_v41 = vadd.s32 1, %v930_v18  ;;  %v1000_v22 = vor.u32 8388608, %v999_v24  ;;  %v3745_v48 = vshrl.u32 %v1004_v6, 5 }
 0x149   :  { %v1015_v0 = vshll.u32 %v4482_v57, %v1006_v40  ;;  %v3748_v60 = vor.u32 %v1010_v19, %v1009_v34  ;;  %v4483_v28 = vmov 2102212464   ;;  %v4484_v43 = vmov 920167782  }
 0x14a   :  { %v3750_v25 = vor.u32 %v1013_v36, %v1012_v55  ;;  %v1016_v15 = vshrl.u32 %v4483_v28, %v3730_v39  ;;  %v1018_v54 = vshll.u32 %v4483_v28, %v1006_v40  ;;  %v935_v47 = vsel %vm933_vm8, %v934_v41, %v930_v18 }
 0x14b   :  { %v1019_v59 = vshrl.u32 %v4484_v43, %v3730_v39  ;;  %v1021_v50 = vshll.u32 %v4484_v43, %v1006_v40  ;;  %v1022_v6 = vshrl.u32 %v4481_v9, %v3730_v39  ;;  %v3761_v21 = vmul.f32 %v671_v13, %v3575_v31 }
 0x14c   :  { %v797_v2 = vor.u32 %v796_v61, %v795_v49  ;;  %v936_v26 = vadd.s32 %v935_v47, %v931_v38  ;;  %v3763_v20 = vor.u32 %v1016_v15, %v1015_v0  ;;  %v801_v24 = vor.u32 4788187, %v800_v35 }
 0x14d   :  { %v1020_v34 = vor.u32 %v1019_v59, %v1018_v54  ;;  %v1023_v19 = vor.u32 %v1022_v6, %v1021_v50  ;;  %vm1024_vm9 = vcmp.lt.s32.totalorder %v3745_v48, 1  ;;  %vm686_vm10 = vcmp.lt.s32.totalorder %v3293_v32, 0 }
 0x14e   :  { %v937_v18 = vadd.s32 536870912, %v936_v26  ;;  %vm1027_vm11 = vcmp.lt.s32.totalorder %v3745_v48, 4  ;;  %v1032_v31 = vsel %vm1024_vm9, %v3748_v60, %v3750_v25  ;;  %v3772_v40 = vshll.u32 %v1000_v22, 8 }
 0x14f   :  { %vm676_vm14 = vcmp.eq.s32.totalorder %v3620_v1, 0  ;;  %vm1026_vm15 = vcmp.lt.s32.totalorder %v3745_v48, 3  ;;  %v1033_v13 = vsel %vm1027_vm11, %v1020_v34, 920167782  ;;  %v1036_v49 = vsel %vm1024_vm9, %v3750_v25, %v3763_v20 }
 0x150   :  { %v1037_v61 = vsel %vm1027_vm11, %v1023_v19, 1326507024  ;;  %v3784_v35 = vshrl.u32 %v937_v18, 30  ;;  %vm1025_vm0 = vcmp.lt.s32.totalorder %v3745_v48, 2  ;;  %v1034_v38 = vsel %vm1026_vm15, %v3763_v20, %v1033_v13 }
 0x151   :  { %v1038_v55 = vsel %vm1026_vm15, %v1020_v34, %v1037_v61  ;;  %v3792_v36 = vadd.f32 1.0, %v663_v4  ;;  %v802_v41 = vand.u32 2147483647, %v801_v24  ;;  %v1035_v22 = vsel %vm1025_vm0, %v1032_v31, %v1034_v38 }
 0x152   :  { %4485 = vst [vmem:[#allocation12_spill] sm:$0xff] %v3784_v35  ;;  %v1039_v0 = vsel %vm1025_vm0, %v1036_v49, %v1038_v55  ;;  %v939_v15 = vshll.u32 %v3784_v35, 30  ;;  %v1041_v54 = vand.u32 65535, %v3772_v40  ;;  %v808_v50 = vsub.s32 4, %v3515_v10 }
 0x153   :  { %v1043_v47 = vand.u32 65535, %v1039_v0  ;;  %v1044_v59 = vshrl.u32 %v1039_v0, 16  ;;  %v3804_v4 = vadd.f32 %v200_v30, %v3685_v63  ;;  %v1042_v6 = vshrl.u32 %v3772_v40, 16 }
 0x154   :  { %v1066_v24 = vshrl.u32 %v1035_v22, 16  ;;  %v4460_v34 = vxor.u32 2147483648, %v3761_v21  ;;  %v804_v19 = vcvt.s32.f32 %v797_v2  ;;  %v3808_v18 = vsub.s32 %v936_v26, %v939_v15 }
 0x155   :  { %v1046_v31 = vmul.u32 %v1044_v59, %v1041_v54  ;;  %vm679_vm1 = vcmp.eq.s32.totalorder %v3620_v1, 2  ;;  %v3812_v13 = vand.u32 3, %v3628_v7  ;;  %v3815_v49 = vand.u32 3, %v3677_v12 }
 0x156   :  { %v1047_v53 = vmul.u32 %v1043_v47, %v1042_v6  ;;  %v1065_v63 = vand.u32 65535, %v1035_v22  ;;  %v4486_v61 = vand.u32 2147483647, %v3293_v32  ;;  %v805_v2 = vmul.f32 %v804_v19, %v802_v41 }
 0x157   :  { %v3827_v26 = vadd.f32 %v201_v37, %v3693_v52  ;;  %v1049_v7 = vshll.u32 %v1046_v31, 16  ;;  %vm675_vm3 = vcmp.lt.s32.totalorder %v3620_v1, 2  ;;  %v809_v12 = vsel %vm686_vm10, %v808_v50, %v3515_v10 }
 0x158   :  { %vm3820_vm2 = vcmp.le.f32.partialorder %v4486_v61, 0.7853982  ;;  %v942_v55 = vsub.s32 0, %v3808_v18  ;;  %v1045_v22 = vmul.u32 %v1043_v47, %v1041_v54  ;;  %v1068_v0 = vmul.u32 %v1066_v24, %v1041_v54 }
 0x159   :  { %4489 = vst [vmem:[#allocation13_spill] sm:$0xff] %v3827_v26  ;;  %v678_v41 = vsel %vm676_vm14, %v3792_v36, %v4460_v34  ;;  %vm941_vm4 = vcmp.lt.s32.totalorder %v3808_v18, 0  ;;  %v1048_v52 = vmul.u32 %v1044_v59, %v1042_v6  ;;  %v1149_v42 = vand.u32 2139095040, %v3804_v4 }
 0x15a   :  { %v1051_v37 = vshll.u32 %v1047_v53, 16  ;;  %vm1053_vm5 = vc.u32 %v1045_v22, %v1049_v7  ;;  %v1055_v15 = vadd.s32 %v1049_v7, %v1045_v22  ;;  %v1069_v19 = vmul.u32 %v1065_v63, %v1042_v6 }
 0x15b   :  { %v806_v10 = vxor.u32 2147483648, %v805_v2  ;;  %v1054_v50 = vsel %vm1053_vm5, 1, %v2971_v5  ;;  %v1067_v47 = vmul.u32 %v1065_v63, %v1041_v54  ;;  %v1071_v61 = vshll.u32 %v1068_v0, 16 }
 0x15c   :  { %vm673_vm6 = vweird.f32 %v3034_v46  ;;  %vm1601_vm7 = vcmp.eq.s32.totalorder %v3670_v58, 0  ;;  %v943_v62 = vsel %vm941_vm4, %v942_v55, %v3808_v18  ;;  %v1056_v34 = vadd.s32 %v1054_v50, %v1048_v52 }
 0x15d   :  { %vm1057_vm8 = vc.u32 %v1055_v15, %v1051_v37  ;;  %v1070_v59 = vmul.u32 %v1066_v24, %v1042_v6  ;;  %v1073_v14 = vshll.u32 %v1069_v19, 16  ;;  %vm1075_vm14 = vc.u32 %v1067_v47, %v1071_v61 }
 0x15e   :  { %v1058_v16 = vsel %vm1057_vm8, 1, %v2971_v5  ;;  %v1077_v7 = vadd.s32 %v1071_v61, %v1067_v47  ;;  %v1050_v22 = vshrl.u32 %v1046_v31, 16  ;;  %v1076_v35 = vsel %vm1075_vm14, 1, %v2971_v5 }
 0x15f   :  { %v1060_v30 = vadd.s32 %v1058_v16, %v1056_v34  ;;  %v1150_v54 = vshrl.u32 %v1149_v42, 23  ;;  %v4490_v63 = vxor.u32 2147483648, %v3792_v36  ;;  %vm1604_vm4 = vcmp.eq.s32.totalorder %v3670_v58, 2 }
 0x160   :  { %vm1759_vm5 = vcmp.eq.s32.totalorder %v3812_v13, 2  ;;  %v944_v6 = vclz %v943_v62  ;;  %v1078_v24 = vadd.s32 %v1076_v35, %v1070_v59  ;;  %vm1079_vm8 = vc.u32 %v1077_v7, %v1073_v14 }
 0x161   :  { %v681_v51 = vsel %vm679_vm1, %v4490_v63, %v3761_v21  ;;  %v811_v31 = vsel %vm3820_vm2, 0, %v809_v12  ;;  %vm1914_vm13 = vcmp.eq.s32.totalorder %v3815_v49, 2  ;;  %v4491_v16 = vmov 683565275  }
 0x162   :  { %v1008_v34 = vshrl.u32 %v4491_v16, %v3730_v39  ;;  %v1029_v55 = vsel %vm1027_vm11, %v3763_v20, 2102212464  ;;  %v1061_v52 = vadd.s32 %v1060_v30, %v1050_v22  ;;  %v682_v42 = vsel %vm675_vm3, %v678_v41, %v681_v51 }
 0x163   :  { %vm1600_vm1 = vcmp.lt.s32.totalorder %v3670_v58, 2  ;;  %vm1756_vm14 = vcmp.eq.s32.totalorder %v3812_v13, 0  ;;  %v1052_v62 = vshrl.u32 %v1047_v53, 16  ;;  %v1080_v35 = vsel %vm1079_vm8, 1, %v2971_v5 }
 0x164   :  { %v2823_v12 = vadd.s32 4294967169, %v1150_v54  ;;  %v807_v37 = vsel %vm686_vm10, %v806_v10, %v805_v2  ;;  %v1028_v39 = vsel %vm1024_vm9, %v1008_v34, %v3748_v60  ;;  %v1072_v20 = vshrl.u32 %v1068_v0, 16 }
 0x165   :  { %v1082_v30 = vadd.s32 %v1080_v35, %v1078_v24  ;;  %v2818_v15 = vadd.s32 4294967294, %v944_v6  ;;  %v1030_v51 = vsel %vm1026_vm15, %v3750_v25, %v1029_v55  ;;  %v3875_v1 = vadd.s32 %v1061_v52, %v1052_v62 }
 0x166   :  { %v1156_v53 = vadd.s32 1, %v2823_v12  ;;  %v3877_v41 = vand.u32 3, %v811_v31  ;;  %v2063_v50 = vadd.s32 3, %v811_v31  ;;  %v1074_v47 = vshrl.u32 %v1069_v19, 16 }
 0x167   :  { %v1083_v61 = vadd.s32 %v1082_v30, %v1072_v20  ;;  %v3881_v2 = vsel %vm673_vm6, nan, %v682_v42  ;;  %v4493_v60 = vxor.u32 2147483648, %v3520_v33  ;;  %v3888_v10 = vadd.s32 %v1077_v7, %v1073_v14 }
 0x168   :  { %4492 = vst [vmem:[#allocation14_spill] sm:$0xff] %v3881_v2  ;;  %vm1157_vm9 = vcmp.gt.s32.totalorder %v1156_v53, 0  ;;  %v3893_v25 = vsel %vm3820_vm2, %v3293_v32, %v807_v37  ;;  %v1031_v19 = vsel %vm1025_vm0, %v1028_v39, %v1030_v51  ;;  %vm2819_vm10 = vcmp.lt.s32.totalorder %v2818_v15, 0 }
 0x169   :  { %v1603_v0 = vsel %vm1601_vm7, %v3529_v17, %v4493_v60  ;;  %v1084_v59 = vadd.s32 %v1083_v61, %v1074_v47  ;;  %v1158_v22 = vsel %vm1157_vm9, %v1156_v53, 0  ;;  %vm1087_vm11 = vc.u32 %v3875_v1, %v3888_v10 }
 0x16a   :  { %v4470_v54 = vand.u32 2147483647, %v3804_v4  ;;  %v1160_v63 = vand.u32 31, %v1158_v22  ;;  %v4494_v14 = vxor.u32 2147483648, %v3529_v17  ;;  %v4495_v7 = vxor.u32 2147483648, %v3541_v3 }
 0x16b   :  { %vm1911_vm15 = vcmp.eq.s32.totalorder %v3815_v49, 0  ;;  %v3911_v6 = vand.u32 3, %v2063_v50  ;;  %v1088_v24 = vadd.s32 1, %v1084_v59  ;;  %v3915_v31 = vmul.f32 %v3893_v25, %v3893_v25 }
 0x16c   :  { %v1606_v38 = vsel %vm1604_vm4, %v4494_v14, %v3520_v33  ;;  %v1761_v48 = vsel %vm1759_vm5, %v4495_v7, %v3532_v23  ;;  %vm1755_vm0 = vcmp.lt.s32.totalorder %v3812_v13, 2  ;;  %v4496_v33 = vxor.u32 2147483648, %v3792_v36 }
 0x16d   :  { %v1085_v34 = vmul.u32 %v3772_v40, %v1031_v19  ;;  %v3926_v55 = vsub.s32 32, %v1160_v63  ;;  %v1607_v52 = vsel %vm1600_vm1, %v1603_v0, %v1606_v38  ;;  %v4497_v42 = vxor.u32 2147483648, %v3532_v23 }
 0x16e   :  { %v3923_v17 = vsel %vm1914_vm13, %v4496_v33, %v3761_v21  ;;  %v3936_v35 = vsel %vm2819_vm10, 0, %v2818_v15  ;;  %v1089_v12 = vsel %vm1087_vm11, %v1088_v24, %v1084_v59  ;;  %v1153_v40 = vand.u32 8388607, %v4470_v54 }
 0x16f   :  { %v1758_v62 = vsel %vm1756_vm14, %v3541_v3, %v4497_v42  ;;  %v1090_v37 = vadd.s32 %v1089_v12, %v1085_v34  ;;  %v3943_v39 = vshrl.u32 %v1158_v22, 5  ;;  %v1172_v58 = vshll.u32 %v4483_v28, %v1160_v63 }
 0x170   :  { %v4498_v23 = vmov 2475754826   ;;  %v1167_v3 = vshrl.u32 %v4482_v57, %v3926_v55  ;;  %v1170_v30 = vshrl.u32 %v4483_v28, %v3926_v55  ;;  %v1173_v15 = vshrl.u32 %v4484_v43, %v3926_v55 }
 0x171   :  { %v1164_v20 = vshrl.u32 %v4498_v23, %v3926_v55  ;;  %v813_v51 = vmul.f32 -0.001358992, %v3915_v31  ;;  %v952_v53 = vsub.s32 4294967266, %v3936_v35  ;;  %v1091_v50 = vadd.s32 536870912, %v1090_v37 }
 0x172   :  { %v1176_v47 = vshrl.u32 %v4481_v9, %v3926_v55  ;;  %v1163_v61 = vshll.u32 %v4491_v16, %v1160_v63  ;;  %v1166_v60 = vshll.u32 %v4498_v23, %v1160_v63  ;;  %v1169_v0 = vshll.u32 %v4482_v57, %v1160_v63 }
 0x173   :  { %v1174_v19 = vor.u32 %v1173_v15, %v1172_v58  ;;  %v820_v59 = vmul.f32 -0.00019511016, %v3915_v31  ;;  %v3962_v22 = vshrl.u32 %v1091_v50, 30  ;;  %v1154_v14 = vor.u32 8388608, %v1153_v40 }
 0x174   :  { %v1175_v38 = vshll.u32 %v4484_v43, %v1160_v63  ;;  %v3965_v7 = vor.u32 %v1164_v20, %v1163_v61  ;;  %v3967_v24 = vor.u32 %v1167_v3, %v1166_v60  ;;  %v3969_v33 = vor.u32 %v1170_v30, %v1169_v0 }
 0x175   :  { %vm1181_vm13 = vcmp.lt.s32.totalorder %v3943_v39, 4  ;;  %v4499_v34 = vxor.u32 2147483648, %v3761_v21  ;;  %v1093_v12 = vshll.u32 %v3962_v22, 30  ;;  %v814_v40 = vadd.f32 0.041655596, %v813_v51 }
 0x176   :  { %v1177_v58 = vor.u32 %v1176_v47, %v1175_v38  ;;  %v1187_v63 = vsel %vm1181_vm13, %v1174_v19, 920167782  ;;  %v3982_v20 = vsel %vm365_vm12, nan, %v1607_v52  ;;  %v1762_v3 = vsel %vm1755_vm0, %v1758_v62, %v1761_v48 }
 0x177   :  { %v1913_v42 = vsel %vm1911_vm15, %v3792_v36, %v4499_v34  ;;  %vm1910_vm2 = vcmp.lt.s32.totalorder %v3815_v49, 2  ;;  %v953_v21 = vadd.s32 127, %v952_v53  ;;  %v821_v30 = vadd.f32 0.008332121, %v820_v59 }
 0x178   :  { %v3987_v15 = vsub.s32 %v1090_v37, %v1093_v12  ;;  %vm1178_vm3 = vcmp.lt.s32.totalorder %v3943_v39, 1  ;;  %vm1180_vm7 = vcmp.lt.s32.totalorder %v3943_v39, 3  ;;  %v948_v36 = vsub.s32 32, %v3936_v35 }
 0x179   :  { %v1186_v44 = vsel %vm1178_vm3, %v3965_v7, %v3967_v24  ;;  %v1188_v13 = vsel %vm1180_vm7, %v3969_v33, %v1187_v63  ;;  %v3999_v48 = vshll.u32 %v1154_v14, 8  ;;  %v1190_v62 = vsel %vm1178_vm3, %v3967_v24, %v3969_v33 }
 0x17a   :  { %vm1095_vm12 = vcmp.lt.s32.totalorder %v3987_v15, 0  ;;  %v1096_v52 = vsub.s32 0, %v3987_v15  ;;  %v1191_v37 = vsel %vm1181_vm13, %v1177_v58, 1326507024  ;;  %v932_v51 = vadd.s32 %v3734_v27, %v3726_v29 }
 0x17b   :  { %v954_v53 = vshll.u32 %v953_v21, 23  ;;  %vm1179_vm4 = vcmp.lt.s32.totalorder %v3943_v39, 2  ;;  %v1192_v50 = vsel %vm1180_vm7, %v1174_v19, %v1191_v37  ;;  %v815_v47 = vmul.f32 %v814_v40, %v3915_v31  ;;  %v4507_v39 = vld [vmem:[#allocation11_spill] sm:$0xff] }
 0x17c   :  { %vm4500_vm5 = vweird.f32 %v3032_v45  ;;  %v1097_v60 = vsel %vm1095_vm12, %v1096_v52, %v3987_v15  ;;  %v1189_v0 = vsel %vm1179_vm4, %v1186_v44, %v1188_v13  ;;  %v822_v59 = vmul.f32 %v821_v30, %v3915_v31 }
 0x17d   :  { %v4017_v61 = vsel %vm4500_vm5, nan, %v1762_v3  ;;  %v950_v29 = vshrl.u32 %v932_v51, %v948_v36  ;;  %v1098_v27 = vclz %v1097_v60  ;;  %v1193_v14 = vsel %vm1179_vm4, %v1190_v62, %v1192_v50 }
 0x17e   :  { %v1195_v19 = vand.u32 65535, %v3999_v48  ;;  %v1196_v38 = vshrl.u32 %v3999_v48, 16  ;;  %v1197_v34 = vand.u32 65535, %v1193_v14  ;;  %v1198_v45 = vshrl.u32 %v1193_v14, 16 }
 0x17f   :  { %v949_v12 = vshll.u32 %v3808_v18, %v3936_v35  ;;  %v955_v58 = vor.u32 4788187, %v954_v53  ;;  %v2821_v63 = vadd.s32 4294967294, %v1098_v27  ;;  %v1220_v40 = vshrl.u32 %v1189_v0, 16 }
 0x180   :  { %v816_v3 = vadd.f32 -0.4999988, %v815_v47  ;;  %v4032_v21 = vsel %vm1910_vm2, %v1913_v42, %v3923_v17  ;;  %v1200_v30 = vmul.u32 %v1198_v45, %v1195_v19  ;;  %v4034_v36 = vmul.u32 %v1197_v34, %v1196_v38 }
 0x181   :  { %v823_v44 = vadd.f32 -0.16666654, %v822_v59  ;;  %v951_v13 = vor.u32 %v950_v29, %v949_v12  ;;  %v1086_v52 = vadd.s32 %v3888_v10, %v3875_v1  ;;  %vm2822_vm8 = vcmp.lt.s32.totalorder %v2821_v63, 0 }
 0x182   :  { %v1101_v62 = vsel %vm2822_vm8, 0, %v2821_v63  ;;  %v1199_v18 = vmul.u32 %v1197_v34, %v1195_v19  ;;  %v1203_v35 = vshll.u32 %v1200_v30, 16  ;;  %v1219_v37 = vand.u32 65535, %v1189_v0 }
 0x183   :  { %v956_v51 = vand.u32 2147483647, %v955_v58  ;;  %v1102_v53 = vsub.s32 32, %v1101_v62  ;;  %v1202_v50 = vmul.u32 %v1198_v45, %v1196_v38  ;;  %v1222_v47 = vmul.u32 %v1220_v40, %v1195_v19 }
 0x184   :  { %v1106_v49 = vsub.s32 4294967266, %v1101_v62  ;;  %v1205_v17 = vshll.u32 %v4034_v36, 16  ;;  %vm1207_vm1 = vc.u32 %v1199_v18, %v1203_v35  ;;  %v1209_v42 = vadd.s32 %v1203_v35, %v1199_v18 }
 0x185   :  { %v958_v60 = vcvt.s32.f32 %v951_v13  ;;  %v1104_v59 = vshrl.u32 %v1086_v52, %v1102_v53  ;;  %v1208_v29 = vsel %vm1207_vm1, 1, %v2971_v5  ;;  %v1303_v1 = vand.u32 2139095040, %v3827_v26 }
 0x186   :  { %v1107_v10 = vadd.s32 127, %v1106_v49  ;;  %v1210_v27 = vadd.s32 %v1208_v29, %v1202_v50  ;;  %vm1211_vm14 = vc.u32 %v1209_v42, %v1205_v17  ;;  %v1223_v14 = vmul.u32 %v1219_v37, %v1196_v38 }
 0x187   :  { %vm840_vm9 = vcmp.lt.s32.totalorder %v3503_v11, 0  ;;  %v959_v0 = vmul.f32 %v958_v60, %v956_v51  ;;  %v1103_v34 = vshll.u32 %v3987_v15, %v1101_v62  ;;  %v1212_v45 = vsel %vm1211_vm14, 1, %v2971_v5 }
 0x188   :  { %v1225_v12 = vshll.u32 %v1222_v47, 16  ;;  %v824_v58 = vmul.f32 %v823_v44, %v3915_v31  ;;  %v1108_v63 = vshll.u32 %v1107_v10, 23  ;;  %v1214_v13 = vadd.s32 %v1212_v45, %v1210_v27 }
 0x189   :  { %v1221_v52 = vmul.u32 %v1219_v37, %v1195_v19  ;;  %v1105_v18 = vor.u32 %v1104_v59, %v1103_v34  ;;  %v1162_v35 = vshrl.u32 %v4491_v16, %v3926_v55  ;;  %v1204_v53 = vshrl.u32 %v1200_v30, 16 }
 0x18a   :  { %v1224_v50 = vmul.u32 %v1220_v40, %v1196_v38  ;;  %v4501_v49 = vand.u32 2147483647, %v3503_v11  ;;  %v1109_v15 = vor.u32 4788187, %v1108_v63  ;;  %v1227_v62 = vshll.u32 %v1223_v14, 16 }
 0x18b   :  { %vm1229_vm11 = vc.u32 %v1221_v52, %v1225_v12  ;;  %v1231_v17 = vadd.s32 %v1225_v12, %v1221_v52  ;;  %v960_v44 = vxor.u32 2147483648, %v959_v0  ;;  %v1215_v42 = vadd.s32 %v1214_v13, %v1204_v53 }
 0x18c   :  { %vm4049_vm10 = vcmp.le.f32.partialorder %v4501_v49, 0.7853982  ;;  %v1230_v19 = vsel %vm1229_vm11, 1, %v2971_v5  ;;  %v1304_v37 = vshrl.u32 %v1303_v1, 23  ;;  %v1110_v60 = vand.u32 2147483647, %v1109_v15 }
 0x18d   :  { %v1183_v55 = vsel %vm1181_vm13, %v3969_v33, 2102212464  ;;  %v1232_v38 = vadd.s32 %v1230_v19, %v1224_v50  ;;  %vm1233_vm15 = vc.u32 %v1231_v17, %v1227_v62  ;;  %v1112_v40 = vcvt.s32.f32 %v1105_v18 }
 0x18e   :  { %v1206_v30 = vshrl.u32 %v4034_v36, 16  ;;  %v1234_v59 = vsel %vm1233_vm15, 1, %v2971_v5  ;;  %v2826_v29 = vadd.s32 4294967169, %v1304_v37  ;;  %v817_v10 = vmul.f32 %v816_v3, %v3915_v31 }
 0x18f   :  { %vm994_vm0 = vcmp.lt.s32.totalorder %v3604_v8, 0  ;;  %v1182_v1 = vsel %vm1178_vm3, %v1162_v35, %v3965_v7  ;;  %v1226_v27 = vshrl.u32 %v1222_v47, 16  ;;  %v1236_v34 = vadd.s32 %v1234_v59, %v1232_v38 }
 0x190   :  { %v1113_v45 = vmul.f32 %v1112_v40, %v1110_v60  ;;  %v1184_v33 = vsel %vm1180_vm7, %v3967_v24, %v1183_v55  ;;  %v4067_v12 = vadd.s32 %v1215_v42, %v1206_v30  ;;  %v1310_v36 = vadd.s32 1, %v2826_v29 }
 0x191   :  { %v825_v63 = vadd.f32 1.0, %v824_v58  ;;  %v961_v31 = vsel %vm840_vm9, %v960_v44, %v959_v0  ;;  %v1228_v3 = vshrl.u32 %v1223_v14, 16  ;;  %v1237_v13 = vadd.s32 %v1236_v34, %v1226_v27 }
 0x192   :  { %v4074_v7 = vsel %vm673_vm6, nan, %v4032_v21  ;;  %v4504_v52 = vand.u32 2147483647, %v3604_v8  ;;  %v4083_v18 = vadd.s32 %v1231_v17, %v1227_v62  ;;  %vm1311_vm2 = vcmp.gt.s32.totalorder %v1310_v36, 0 }
 0x193   :  { %v4085_v58 = vadd.f32 1.0, %v817_v10  ;;  %v1185_v14 = vsel %vm1179_vm4, %v1182_v1, %v1184_v33  ;;  %v1238_v0 = vadd.s32 %v1237_v13, %v1228_v3  ;;  %v1312_v46 = vsel %vm1311_vm2, %v1310_v36, 0 }
 0x194   :  { %vm4079_vm13 = vcmp.le.f32.partialorder %v4504_v52, 0.7853982  ;;  %vm833_vm6 = vcmp.eq.s32.totalorder %v3877_v41, 2  ;;  %v4093_v21 = vsel %vm4049_vm10, %v3503_v11, %v961_v31  ;;  %v1114_v35 = vxor.u32 2147483648, %v1113_v45 }
 0x195   :  { %vm1241_vm3 = vc.u32 %v4067_v12, %v4083_v18  ;;  %v1314_v53 = vand.u32 31, %v1312_v46  ;;  %v4098_v50 = vmul.f32 %v825_v63, %v3893_v25  ;;  %vm830_vm7 = vcmp.eq.s32.totalorder %v3877_v41, 0 }
 0x196   :  { %vm2069_vm12 = vcmp.eq.s32.totalorder %v3911_v6, 2  ;;  %v1242_v15 = vadd.s32 1, %v1238_v0  ;;  %v4469_v62 = vand.u32 2147483647, %v3827_v26  ;;  %v1239_v42 = vmul.u32 %v3999_v48, %v1185_v14 }
 0x197   :  { %v4107_v19 = vsub.s32 32, %v1314_v53  ;;  %v834_v25 = vxor.u32 2147483648, %v4085_v58  ;;  %v4113_v60 = vmul.f32 %v4093_v21, %v4093_v21  ;;  %v1115_v38 = vsel %vm994_vm0, %v1114_v35, %v1113_v45 }
 0x198   :  { %v1243_v55 = vsel %vm1241_vm3, %v1242_v15, %v1238_v0  ;;  %v831_v59 = vxor.u32 2147483648, %v4098_v50  ;;  %v1307_v29 = vand.u32 8388607, %v4469_v62  ;;  %v1317_v10 = vshll.u32 %v4491_v16, %v1314_v53 }
 0x199   :  { %v1244_v40 = vadd.s32 %v1243_v55, %v1239_v42  ;;  %v1318_v30 = vshrl.u32 %v4498_v23, %v4107_v19  ;;  %v1321_v48 = vshrl.u32 %v4482_v57, %v4107_v19  ;;  %v1327_v1 = vshrl.u32 %v4484_v43, %v4107_v19 }
 0x19a   :  { %vm829_vm4 = vcmp.lt.s32.totalorder %v3877_v41, 2  ;;  %vm2066_vm5 = vcmp.eq.s32.totalorder %v3911_v6, 0  ;;  %v1320_v34 = vshll.u32 %v4498_v23, %v1314_v53  ;;  %v1324_v45 = vshrl.u32 %v4483_v28, %v4107_v19 }
 0x19b   :  { %v1245_v27 = vadd.s32 536870912, %v1244_v40  ;;  %v1326_v33 = vshll.u32 %v4483_v28, %v1314_v53  ;;  %v974_v36 = vmul.f32 -0.00019511016, %v4113_v60  ;;  %v4137_v63 = vsel %vm4079_vm13, %v3604_v8, %v1115_v38 }
 0x19c   :  { %v4139_v31 = vshrl.u32 %v1312_v46, 5  ;;  %v1323_v3 = vshll.u32 %v4482_v57, %v1314_v53  ;;  %v4144_v52 = vor.u32 %v1318_v30, %v1317_v10  ;;  %v4146_v23 = vor.u32 %v1321_v48, %v1320_v34 }
 0x19d   :  { %v4142_v13 = vshrl.u32 %v1245_v27, 30  ;;  %v1328_v14 = vor.u32 %v1327_v1, %v1326_v33  ;;  %v835_v28 = vsel %vm833_vm6, %v834_v25, %v4098_v50  ;;  %v1308_v35 = vor.u32 8388608, %v1307_v29  ;;  %v4508_v33 = vld [vmem:[#allocation12_spill] sm:$0xff] }
 0x19e   :  { %v1330_v46 = vshrl.u32 %v4481_v9, %v4107_v19  ;;  %v832_v57 = vsel %vm830_vm7, %v4085_v58, %v831_v59  ;;  %v4160_v15 = vsel %vm2069_vm12, %v834_v25, %v4098_v50  ;;  %v4163_v55 = vor.u32 %v1324_v45, %v1323_v3 }
 0x19f   :  { %v1247_v42 = vshll.u32 %v4142_v13, 30  ;;  %v4167_v38 = vmul.f32 %v4137_v63, %v4137_v63  ;;  %v1329_v30 = vshll.u32 %v4484_v43, %v1314_v53  ;;  %vm1332_vm8 = vcmp.lt.s32.totalorder %v4139_v31, 1 }
 0x1a0   :  { %vm1335_vm1 = vcmp.lt.s32.totalorder %v4139_v31, 4  ;;  %v975_v9 = vadd.f32 0.008332121, %v974_v36  ;;  %v1340_v50 = vsel %vm1332_vm8, %v4144_v52, %v4146_v23  ;;  %v967_v29 = vmul.f32 -0.001358992, %v4113_v60 }
 0x1a1   :  { %v1248_v48 = vsub.s32 %v1244_v40, %v1247_v42  ;;  %v1341_v25 = vsel %vm1335_vm1, %v1328_v14, 920167782  ;;  %v1331_v10 = vor.u32 %v1330_v46, %v1329_v30  ;;  %vm1334_vm14 = vcmp.lt.s32.totalorder %v4139_v31, 3 }
 0x1a2   :  { %v4180_v43 = vshll.u32 %v1308_v35, 8  ;;  %vm1333_vm15 = vcmp.lt.s32.totalorder %v4139_v31, 2  ;;  %v1342_v40 = vsel %vm1334_vm14, %v4163_v55, %v1341_v25  ;;  %v4188_v1 = vsel %vm829_vm4, %v832_v57, %v835_v28 }
 0x1a3   :  { %vm1249_vm11 = vcmp.lt.s32.totalorder %v1248_v48, 0  ;;  %v1250_v53 = vsub.s32 0, %v1248_v48  ;;  %v4193_v27 = vsel %vm2066_vm5, %v4085_v58, %v831_v59  ;;  %v1128_v34 = vmul.f32 -0.00019511016, %v4167_v38 }
 0x1a4   :  { %v1343_v45 = vsel %vm1333_vm15, %v1340_v50, %v1342_v40  ;;  %v976_v3 = vmul.f32 %v975_v9, %v4113_v60  ;;  %v1344_v41 = vsel %vm1332_vm8, %v4146_v23, %v4163_v55  ;;  %v4204_v28 = vadd.f32 0.041655596, %v967_v29 }
 0x1a5   :  { %v1251_v35 = vsel %vm1249_vm11, %v1250_v53, %v1248_v48  ;;  %v1345_v46 = vsel %vm1335_vm1, %v1331_v10, 1326507024  ;;  %v1121_v57 = vmul.f32 -0.001358992, %v4167_v38  ;;  %v1349_v30 = vand.u32 65535, %v4180_v43 }
 0x1a6   :  { %v1252_v59 = vclz %v1251_v35  ;;  %v1346_v42 = vsel %vm1334_vm14, %v1328_v14, %v1345_v46  ;;  %v1374_v9 = vshrl.u32 %v1343_v45, 16  ;;  %v1129_v50 = vadd.f32 0.008332121, %v1128_v34 }
 0x1a7   :  { %v1347_v29 = vsel %vm1333_vm15, %v1344_v41, %v1346_v42  ;;  %v1373_v53 = vand.u32 65535, %v1343_v45  ;;  %v4215_v40 = vadd.f32 -0.16666654, %v976_v3  ;;  %v1350_v35 = vshrl.u32 %v4180_v43, 16 }
 0x1a8   :  { %v2824_v25 = vadd.s32 4294967294, %v1252_v59  ;;  %v1351_v62 = vand.u32 65535, %v1347_v29  ;;  %v1352_v10 = vshrl.u32 %v1347_v29, 16  ;;  %v1240_v17 = vadd.s32 %v4083_v18, %v4067_v12 }
 0x1a9   :  { %v1316_v14 = vshrl.u32 %v4491_v16, %v4107_v19  ;;  %v1376_v46 = vmul.u32 %v1374_v9, %v1349_v30  ;;  %v1122_v34 = vadd.f32 0.041655596, %v1121_v57  ;;  %v1130_v45 = vmul.f32 %v1129_v50, %v4167_v38 }
 0x1aa   :  { %vm2825_vm2 = vcmp.lt.s32.totalorder %v2824_v25, 0  ;;  %v1354_v0 = vmul.u32 %v1352_v10, %v1349_v30  ;;  %v1355_v49 = vmul.u32 %v1351_v62, %v1350_v35  ;;  %v1377_v42 = vmul.u32 %v1373_v53, %v1350_v35 }
 0x1ab   :  { %v1255_v59 = vsel %vm2825_vm2, 0, %v2824_v25  ;;  %v1353_v47 = vmul.u32 %v1351_v62, %v1349_v30  ;;  %v1375_v44 = vmul.u32 %v1373_v53, %v1349_v30  ;;  %v1356_v18 = vmul.u32 %v1352_v10, %v1350_v35 }
 0x1ac   :  { %v1256_v3 = vsub.s32 32, %v1255_v59  ;;  %v1260_v41 = vsub.s32 4294967266, %v1255_v59  ;;  %v1257_v37 = vshll.u32 %v1248_v48, %v1255_v59  ;;  %v1357_v29 = vshll.u32 %v1354_v0, 16 }
 0x1ad   :  { %v1379_v58 = vshll.u32 %v1376_v46, 16  ;;  %v1359_v36 = vshll.u32 %v1355_v49, 16  ;;  %v1378_v19 = vmul.u32 %v1374_v9, %v1350_v35  ;;  %v1381_v50 = vshll.u32 %v1377_v42, 16 }
 0x1ae   :  { %v1258_v54 = vshrl.u32 %v1240_v17, %v1256_v3  ;;  %v1261_v12 = vadd.s32 127, %v1260_v41  ;;  %vm1361_vm6 = vc.u32 %v1353_v47, %v1357_v29  ;;  %v1363_v16 = vadd.s32 %v1357_v29, %v1353_v47 }
 0x1af   :  { %v1362_v26 = vsel %vm1361_vm6, 1, %v2971_v5  ;;  %vm1383_vm7 = vc.u32 %v1375_v44, %v1379_v58  ;;  %v1385_v48 = vadd.s32 %v1379_v58, %v1375_v44  ;;  %v1337_v17 = vsel %vm1335_vm1, %v4163_v55, 2102212464 }
 0x1b0   :  { %v1259_v57 = vor.u32 %v1258_v54, %v1257_v37  ;;  %v1262_v25 = vshll.u32 %v1261_v12, 23  ;;  %v1364_v2 = vadd.s32 %v1362_v26, %v1356_v18  ;;  %vm1365_vm3 = vc.u32 %v1363_v16, %v1359_v36 }
 0x1b1   :  { %v1366_v30 = vsel %vm1365_vm3, 1, %v2971_v5  ;;  %v1384_v53 = vsel %vm1383_vm7, 1, %v2971_v5  ;;  %vm2065_vm12 = vcmp.lt.s32.totalorder %v3911_v6, 2  ;;  %v1358_v54 = vshrl.u32 %v1354_v0, 16 }
 0x1b2   :  { %v1263_v62 = vor.u32 4788187, %v1262_v25  ;;  %v1368_v47 = vadd.s32 %v1366_v30, %v1364_v2  ;;  %v1386_v37 = vadd.s32 %v1384_v53, %v1378_v19  ;;  %vm1387_vm4 = vc.u32 %v1385_v48, %v1381_v50 }
 0x1b3   :  { %v1131_v9 = vadd.f32 -0.16666654, %v1130_v45  ;;  %v1266_v36 = vcvt.s32.f32 %v1259_v57  ;;  %v1388_v44 = vsel %vm1387_vm4, 1, %v2971_v5  ;;  %v1360_v58 = vshrl.u32 %v1355_v49, 16 }
 0x1b4   :  { %v1264_v26 = vand.u32 2147483647, %v1263_v62  ;;  %v1369_v35 = vadd.s32 %v1368_v47, %v1358_v54  ;;  %v1380_v10 = vshrl.u32 %v1376_v46, 16  ;;  %v1390_v59 = vadd.s32 %v1388_v44, %v1386_v37 }
 0x1b5   :  { %vm827_vm5 = vweird.f32 %v3293_v32  ;;  %v969_v55 = vmul.f32 %v4204_v28, %v4113_v60  ;;  %v1336_v2 = vsel %vm1332_vm8, %v1316_v14, %v4144_v52  ;;  %v1338_v0 = vsel %vm1334_vm14, %v4146_v23, %v1337_v17 }
 0x1b6   :  { %v1267_v3 = vmul.f32 %v1266_v36, %v1264_v26  ;;  %v1123_v5 = vmul.f32 %v1122_v34, %v4167_v38  ;;  %v4241_v49 = vadd.s32 %v1369_v35, %v1360_v58  ;;  %v1382_v46 = vshrl.u32 %v1377_v42, 16 }
 0x1b7   :  { %v1391_v45 = vadd.s32 %v1390_v59, %v1380_v10  ;;  %v4509_v41 = vsub.s32 4, %v4508_v33  ;;  %vm1148_vm1 = vcmp.lt.s32.totalorder %v3804_v4, 0  ;;  %v4249_v52 = vadd.s32 %v1385_v48, %v1381_v50 }
 0x1b8   :  { %v1268_v29 = vxor.u32 2147483648, %v1267_v3  ;;  %v978_v23 = vmul.f32 %v4215_v40, %v4113_v60  ;;  %v1132_v14 = vmul.f32 %v1131_v9, %v4167_v38  ;;  %v1339_v34 = vsel %vm1333_vm15, %v1336_v2, %v1338_v0 }
 0x1b9   :  { %v963_v28 = vsel %vm840_vm9, %v4509_v41, %v4508_v33  ;;  %v1392_v42 = vadd.s32 %v1391_v45, %v1382_v46  ;;  %v4510_v12 = vsub.s32 4, %v3962_v22  ;;  %v4511_v18 = vand.u32 2147483647, %v3804_v4 }
 0x1ba   :  { %v1269_v40 = vsel %vm1148_vm1, %v1268_v29, %v1267_v3  ;;  %vm1395_vm8 = vc.u32 %v4241_v49, %v4249_v52  ;;  %v970_v31 = vadd.f32 -0.4999988, %v969_v55  ;;  %v1124_v19 = vadd.f32 -0.4999988, %v1123_v5 }
 0x1bb   :  { %v1117_v33 = vsel %vm994_vm0, %v4510_v12, %v3962_v22  ;;  %vm4263_vm9 = vcmp.le.f32.partialorder %v4511_v18, 0.7853982  ;;  %v1396_v25 = vadd.s32 1, %v1392_v42  ;;  %v2072_v22 = vsel %vm2065_vm12, %v4193_v27, %v4160_v15 }
 0x1bc   :  { %v1272_v57 = vsel %vm4263_vm9, %v3804_v4, %v1269_v40  ;;  %v965_v50 = vsel %vm4049_vm10, 0, %v963_v28  ;;  %v1393_v62 = vmul.u32 %v4180_v43, %v1339_v34  ;;  %v979_v17 = vadd.f32 1.0, %v978_v23 }
 0x1bd   :  { %v1274_v48 = vmul.f32 %v1272_v57, %v1272_v57  ;;  %v1133_v30 = vadd.f32 1.0, %v1132_v14  ;;  %v1270_v53 = vsub.s32 4, %v4142_v13  ;;  %v1397_v54 = vsel %vm1395_vm8, %v1396_v25, %v1392_v42 }
 0x1be   :  { %v1119_v47 = vsel %vm4079_vm13, 0, %v1117_v33  ;;  %v1398_v26 = vadd.s32 %v1397_v54, %v1393_v62  ;;  %v4287_v6 = vsel %vm827_vm5, nan, %v4188_v1  ;;  %v971_v51 = vmul.f32 %v970_v31, %v4113_v60 }
 0x1bf   :  { %v1275_v37 = vmul.f32 -0.001358992, %v1274_v48  ;;  %v1282_v9 = vmul.f32 -0.00019511016, %v1274_v48  ;;  %v982_v15 = vand.u32 3, %v965_v50  ;;  %v1125_v43 = vmul.f32 %v1124_v19, %v4167_v38 }
 0x1c0   :  { %v4293_v27 = vsel %vm827_vm5, nan, %v2072_v22  ;;  %v1399_v44 = vadd.s32 536870912, %v1398_v26  ;;  %v4296_v58 = vmul.f32 %v979_v17, %v4093_v21  ;;  %v4299_v35 = vmul.f32 %v1133_v30, %v4137_v63 }
 0x1c1   :  { %v1276_v36 = vadd.f32 0.041655596, %v1275_v37  ;;  %v1283_v24 = vadd.f32 0.008332121, %v1282_v9  ;;  %v1136_v1 = vand.u32 3, %v1119_v47  ;;  %v1271_v60 = vsel %vm1148_vm1, %v1270_v53, %v4142_v13 }
 0x1c2   :  { %v2713_v38 = vrot.slane %v4287_v6, 4  ;;  %v4305_v59 = vshrl.u32 %v1399_v44, 30  ;;  %v4307_v55 = vadd.f32 1.0, %v971_v51  ;;  %vm983_vm10 = vcmp.lt.s32.totalorder %v982_v15, 2  ;;  %v4346_v51 = vld [vmem:[#allocation5 + $0x8] sm:$0x1f] }
 0x1c3   :  { %v1277_v10 = vmul.f32 %v1276_v36, %v1274_v48  ;;  %v1284_v32 = vmul.f32 %v1283_v24, %v1274_v48  ;;  %vm984_vm0 = vcmp.eq.s32.totalorder %v982_v15, 0  ;;  %v4309_v21 = vadd.f32 1.0, %v1125_v43  ;;  %v2884_v36 = vld [vmem:[#allocation5 + $0x10] sm:$0x1f] }
 0x1c4   :  { %vm987_vm13 = vcmp.eq.s32.totalorder %v982_v15, 2  ;;  %v1273_v63 = vsel %vm4263_vm9, 0, %v1271_v60  ;;  %v1401_v2 = vshll.u32 %v4305_v59, 30  ;;  %v985_v13 = vxor.u32 2147483648, %v4296_v58 }
 0x1c5   :  { %v1285_v3 = vadd.f32 -0.16666654, %v1284_v32  ;;  %vm1137_vm14 = vcmp.lt.s32.totalorder %v1136_v1, 2  ;;  %v1139_v0 = vxor.u32 2147483648, %v4299_v35  ;;  %v2218_v5 = vadd.s32 3, %v965_v50 }
 0x1c6   :  { %v1278_v46 = vadd.f32 -0.4999988, %v1277_v10  ;;  %v4316_v41 = vsub.s32 %v1398_v26, %v1401_v2  ;;  %v2373_v28 = vadd.s32 3, %v1119_v47  ;;  %v988_v29 = vxor.u32 2147483648, %v4307_v55  ;;  %v2882_v26 = vld [vmem:[#allocation5] sm:$0x1f] }
 0x1c7   :  { %v1286_v45 = vmul.f32 %v1285_v3, %v1274_v48  ;;  %vm1138_vm11 = vcmp.eq.s32.totalorder %v1136_v1, 0  ;;  %v1142_v23 = vxor.u32 2147483648, %v4309_v21  ;;  %v2528_v14 = vadd.s32 3, %v1273_v63 }
 0x1c8   :  { %v4320_v42 = vand.u32 3, %v1273_v63  ;;  %vm1403_vm15 = vcmp.lt.s32.totalorder %v4316_v41, 0  ;;  %v1404_v12 = vsub.s32 0, %v4316_v41  ;;  %v986_v33 = vsel %vm984_vm0, %v4307_v55, %v985_v13 }
 0x1c9   :  { %v1287_v34 = vadd.f32 1.0, %v1286_v45  ;;  %v1140_v18 = vsel %vm1138_vm11, %v4309_v21, %v1139_v0  ;;  %vm1141_vm2 = vcmp.eq.s32.totalorder %v1136_v1, 2  ;;  %v2219_v16 = vand.u32 3, %v2218_v5 }
 0x1ca   :  { %v1279_v40 = vmul.f32 %v1278_v46, %v1274_v48  ;;  %v1405_v19 = vsel %vm1403_vm15, %v1404_v12, %v4316_v41  ;;  %v2374_v25 = vand.u32 3, %v2373_v28  ;;  %v989_v22 = vsel %vm987_vm13, %v988_v29, %v4296_v58 }
 0x1cb   :  { %v1288_v31 = vmul.f32 %v1287_v34, %v1272_v57  ;;  %v1143_v50 = vsel %vm1141_vm2, %v1142_v23, %v4299_v35  ;;  %v1406_v62 = vclz %v1405_v19  ;;  %v2529_v17 = vand.u32 3, %v2528_v14  ;;  %v4388_v14 = vld [vmem:[#allocation5 + $0x18] sm:$0x1f] }
 0x1cc   :  { %v2737_v30 = vrot.slane %v4293_v27, 4  ;;  %v990_v53 = vsel %vm983_vm10, %v986_v33, %v989_v22  ;;  %v1144_v54 = vsel %vm1137_vm14, %v1140_v18, %v1143_v50  ;;  %vm1292_vm6 = vcmp.eq.s32.totalorder %v4320_v42, 0 }
 0x1cd   :  { %vm1295_vm3 = vcmp.eq.s32.totalorder %v4320_v42, 2  ;;  %v2827_v57 = vadd.s32 4294967294, %v1406_v62  ;;  %vm2220_vm7 = vcmp.lt.s32.totalorder %v2219_v16, 2  ;;  %vm2221_vm12 = vcmp.eq.s32.totalorder %v2219_v16, 0 }
 0x1ce   :  { %vm2224_vm4 = vcmp.eq.s32.totalorder %v2219_v16, 2  ;;  %v1280_v48 = vadd.f32 1.0, %v1279_v40  ;;  %v1293_v47 = vxor.u32 2147483648, %v1288_v31  ;;  %v1394_v37 = vadd.s32 %v4249_v52, %v4241_v49 }
 0x1cf   :  { %vm2375_vm1 = vcmp.lt.s32.totalorder %v2374_v25, 2  ;;  %vm981_vm9 = vweird.f32 %v3503_v11  ;;  %vm2828_vm8 = vcmp.lt.s32.totalorder %v2827_v57, 0  ;;  %vm2376_vm10 = vcmp.eq.s32.totalorder %v2374_v25, 0 }
 0x1d0   :  { %vm2379_vm0 = vcmp.eq.s32.totalorder %v2374_v25, 2  ;;  %vm2530_vm13 = vcmp.lt.s32.totalorder %v2529_v17, 2  ;;  %v1409_v9 = vsel %vm2828_vm8, 0, %v2827_v57  ;;  %vm2531_vm14 = vcmp.eq.s32.totalorder %v2529_v17, 0 }
 0x1d1   :  { %vm218_vm11 = vcmp.gt.f32.partialorder %v2882_v26, 0.5  ;;  %vm219_vm15 = vcmp.gt.f32.partialorder %v4346_v51, 0.5  ;;  %v1410_v15 = vsub.s32 32, %v1409_v9  ;;  %v1414_v43 = vsub.s32 4294967266, %v1409_v9 }
 0x1d2   :  { %vm2534_vm2 = vcmp.eq.s32.totalorder %v2529_v17, 2  ;;  %vm220_vm5 = vcmp.gt.f32.partialorder %v2884_v36, 0.5  ;;  %v1294_v49 = vsel %vm1292_vm6, %v1280_v48, %v1293_v47  ;;  %v1296_v52 = vxor.u32 2147483648, %v1280_v48 }
 0x1d3   :  { %v1411_v24 = vshll.u32 %v4316_v41, %v1409_v9  ;;  %v2226_v44 = vsel %vm2224_vm4, %v988_v29, %v4296_v58  ;;  %v1412_v1 = vshrl.u32 %v1394_v37, %v1410_v15  ;;  %v1415_v60 = vadd.s32 127, %v1414_v43 }
 0x1d4   :  { %v4514_v10 = vrot.slane %v3982_v20, 4  ;;  %v4515_v32 = vrot.slane %v3610_v56, 4  ;;  %v4516_v3 = vrot.slane %v4017_v61, 4  ;;  %v4517_v2 = vrot.slane %v4507_v39, 4  ;;  %v4519_v61 = vld [vmem:[#allocation14_spill] sm:$0xff] }
 0x1d5   :  { %v2223_v46 = vsel %vm2221_vm12, %v4307_v55, %v985_v13  ;;  %v2378_v20 = vsel %vm2376_vm10, %v4309_v21, %v1139_v0  ;;  %v2533_v56 = vsel %vm2531_vm14, %v1280_v48, %v1293_v47  ;;  %v4518_v45 = vrot.slane %v4074_v7, 4 }
 0x1d6   :  { %v2750_v63 = vsel %vm218_vm11, %v4515_v32, %v4514_v10  ;;  %v2751_v5 = vsel %vm219_vm15, %v4517_v2, %v4516_v3  ;;  %v4520_v41 = vrot.slane %v4519_v61, 4  ;;  %v1413_v28 = vor.u32 %v1412_v1, %v1411_v24 }
 0x1d7   :  { %2766 = vst [vmem:[#allocation1] sm:$0xff] %v2750_v63  ;;  %v1416_v29 = vshll.u32 %v1415_v60, 23  ;;  %v2227_v58 = vsel %vm2220_vm7, %v2223_v46, %v2226_v44  ;;  %v2381_v55 = vsel %vm2379_vm0, %v1142_v23, %v4299_v35  ;;  %v1297_v13 = vsel %vm1295_vm3, %v1296_v52, %v1288_v31 }
 0x1d8   :  { %v2752_v39 = vsel %vm220_vm5, %v4520_v41, %v4518_v45  ;;  %2767 = vst [vmem:[#allocation1 + $0x9] sm:$0xff] %v2751_v5  ;;  %v2382_v7 = vsel %vm2375_vm1, %v2378_v20, %v2381_v55  ;;  %v2536_v0 = vsel %vm2534_vm2, %v1296_v52, %v1288_v31  ;;  %vm221_vm6 = vcmp.gt.f32.partialorder %v4388_v14, 0.5 }
 0x1d9   :  { %2768 = vst [vmem:[#allocation1 + $0x12] sm:$0xff] %v2752_v39  ;;  %vm1135_vm7 = vweird.f32 %v3604_v8  ;;  %vm4521_vm12 = vcmp.lt.s32.totalorder %v4320_v42, 2  ;;  %v1417_v34 = vor.u32 4788187, %v1416_v29  ;;  %v2537_v35 = vsel %vm2530_vm13, %v2533_v56, %v2536_v0 }
 0x1da   :  { %v1298_v21 = vsel %vm4521_vm12, %v1294_v49, %v1297_v13  ;;  %v991_v23 = vsel %vm981_vm9, nan, %v990_v53  ;;  %v1145_v12 = vsel %vm1135_vm7, nan, %v1144_v54  ;;  %vm1289_vm3 = vweird.f32 %v3804_v4  ;;  %v4522_v53 = vld [vmem:[#allocation13_spill] sm:$0xff] }
 0x1db   :  { %v2228_v33 = vsel %vm981_vm9, nan, %v2227_v58  ;;  %v1418_v18 = vand.u32 2147483647, %v1417_v34  ;;  %v1420_v16 = vcvt.s32.f32 %v1413_v28  ;;  %v2383_v40 = vsel %vm1135_vm7, nan, %v2382_v7 }
 0x1dc   :  { %v2753_v8 = vsel %vm221_vm6, %v2713_v38, %v2737_v30  ;;  %v1299_v42 = vsel %vm1289_vm3, nan, %v1298_v21  ;;  %v2538_v31 = vsel %vm1289_vm3, nan, %v2537_v35  ;;  %v2714_v25 = vrot.slane %v991_v23, 4 }
 0x1dd   :  { %2769 = vst [vmem:[#allocation1 + $0x1b] sm:$0xff] %v2753_v8  ;;  %v1421_v19 = vmul.f32 %v1420_v16, %v1418_v18  ;;  %v2738_v22 = vrot.slane %v2228_v33, 4  ;;  %v2715_v4 = vrot.slane %v1145_v12, 4  ;;  %v2739_v50 = vrot.slane %v2383_v40, 4 }
 0x1de   :  { %v2716_v62 = vrot.slane %v1299_v42, 4  ;;  %v2740_v17 = vrot.slane %v2538_v31, 4  ;;  %vm1302_vm4 = vcmp.lt.s32.totalorder %v4522_v53, 0  ;;  %v2779_v54 = vlaneseq }
 0x1df   :  { %v1422_v11 = vxor.u32 2147483648, %v1421_v19  ;;  %v4523_v27 = vand.u32 2147483647, %v4522_v53  ;;  %v2754_v30 = vsel %vm218_vm11, %v2714_v25, %v2738_v22  ;;  %v1424_v57 = vsub.s32 4, %v4305_v59 }
 0x1e0   :  { %v2755_v47 = vsel %vm219_vm15, %v2715_v4, %v2739_v50  ;;  %v2756_v9 = vsel %vm220_vm5, %v2716_v62, %v2740_v17  ;;  %vm4423_vm9 = vcmp.lt.s32.totalorder %v2779_v54, 512  ;;  %vm1443_vm11 = vweird.f32 %v4522_v53 }
 0x1e1   :  { %vm4409_vm1 = vcmp.le.f32.partialorder %v4523_v27, 0.7853982  ;;  %v1423_v38 = vsel %vm1302_vm4, %v1422_v11, %v1421_v19  ;;  %v1425_v52 = vsel %vm1302_vm4, %v1424_v57, %v4305_v59 }
 0x1e2   :  { %v1426_v48 = vsel %vm4409_vm1, %v4522_v53, %v1423_v38  ;;  %v1427_v36 = vsel %vm4409_vm1, 0, %v1425_v52 }
 0x1e3   :  { %v1428_v37 = vmul.f32 %v1426_v48, %v1426_v48  ;;  %v2683_v32 = vadd.s32 3, %v1427_v36  ;;  %v1444_v46 = vand.u32 3, %v1427_v36 }
 0x1e4   :  { %v2771_v15 = vld [vmem:[#allocation1 + $0x4] ss:$9 sm:$0xff] }
 0x1e5   :  { %2772 = vst [vmem:[#allocation1] sm:$0xff] %v2754_v30  ;;  %v1429_v26 = vmul.f32 -0.001358992, %v1428_v37  ;;  %v1436_v49 = vmul.f32 -0.00019511016, %v1428_v37  ;;  %v2684_v59 = vand.u32 3, %v2683_v32 }
 0x1e6   :  { %2773 = vst [vmem:[#allocation1 + $0x9] sm:$0xff] %v2755_v47  ;;  %vm1445_vm5 = vcmp.lt.s32.totalorder %v1444_v46, 2  ;;  %vm1446_vm8 = vcmp.eq.s32.totalorder %v1444_v46, 0  ;;  %vm1449_vm10 = vcmp.eq.s32.totalorder %v1444_v46, 2 }
 0x1e7   :  { %2774 = vst [vmem:[#allocation1 + $0x12] sm:$0xff] %v2756_v9  ;;  %v1430_v24 = vadd.f32 0.041655596, %v1429_v26  ;;  %v1437_v51 = vadd.f32 0.008332121, %v1436_v49  ;;  %vm2685_vm0 = vcmp.lt.s32.totalorder %v2684_v59, 2 }
 0x1e8   :  { %2783 = vst.msk [vmem:[#allocation7] sm:$0xf] %vm4423_vm9, %v2771_v15  ;;  %vm2686_vm13 = vcmp.eq.s32.totalorder %v2684_v59, 0  ;;  %vm2689_vm14 = vcmp.eq.s32.totalorder %v2684_v59, 2 }
 0x1e9   :  { %v1431_v44 = vmul.f32 %v1430_v24, %v1428_v37  ;;  %v1438_v1 = vmul.f32 %v1437_v51, %v1428_v37 }
 0x1eb   :  { %v1432_v60 = vadd.f32 -0.4999988, %v1431_v44  ;;  %v1439_v10 = vadd.f32 -0.16666654, %v1438_v1 }
 0x1ed   :  { %v1433_v63 = vmul.f32 %v1432_v60, %v1428_v37  ;;  %v1440_v3 = vmul.f32 %v1439_v10, %v1428_v37 }
 0x1ef   :  { %v1434_v2 = vadd.f32 1.0, %v1433_v63  ;;  %v1441_v5 = vadd.f32 1.0, %v1440_v3 }
 0x1f1   :  { %v1442_v20 = vmul.f32 %v1441_v5, %v1426_v48  ;;  %v1450_v56 = vxor.u32 2147483648, %v1434_v2 }
 0x1f3   :  { %v1447_v45 = vxor.u32 2147483648, %v1442_v20  ;;  %v1451_v41 = vsel %vm1449_vm10, %v1450_v56, %v1442_v20  ;;  %v2691_v28 = vsel %vm2689_vm14, %v1450_v56, %v1442_v20 }
 0x1f5   :  { %v1448_v61 = vsel %vm1446_vm8, %v1434_v2, %v1447_v45  ;;  %v2688_v39 = vsel %vm2686_vm13, %v1434_v2, %v1447_v45 }
 0x1f6   :  { %v1452_v29 = vsel %vm1445_vm5, %v1448_v61, %v1451_v41  ;;  %v2692_v58 = vsel %vm2685_vm0, %v2688_v39, %v2691_v28 }
 0x1f7   :  { %v1453_v55 = vsel %vm1443_vm11, nan, %v1452_v29  ;;  %v2693_v13 = vsel %vm1443_vm11, nan, %v2692_v58 }
 0x1f8   :  { %v2717_v7 = vrot.slane %v1453_v55, 4  ;;  %v2741_v0 = vrot.slane %v2693_v13, 4 }
 0x1fa   :  { %v2757_v21 = vsel %vm221_vm6, %v2717_v7, %v2741_v0 }
 0x1fb   :  { %2775 = vst [vmem:[#allocation1 + $0x1b] sm:$0xff] %v2757_v21 }
 0x202   :  { %v2776_v34 = vld [vmem:[#allocation1 + $0x4] ss:$9 sm:$0xff] }
 0x203   :  { %2784 = vst.msk [vmem:[#allocation7 + $0x4] sm:$0xf] %vm4423_vm9, %v2776_v34 }
 0x204   :  { %2797 = dma.vmem_to_hbm [thread:$0]  %s2790_s1, 128, %s2792_s23, [#allocation4], %s2979_s24, %s2979_s24, %s2980_s25  }
 0x205   :  { %2962 = dma.done.wait [#allocation4], 128  }
 0x206   :  { %2963 = vsyncadd [#allocation4], 4294967168 }
 0x207   :  { %2802 = vsyncpa [#allocation3], 1 }
 0x208   :  { %2803 = vsyncpa [#allocation6], 1 }
 0x209   :  { %2804 = vsyncpa [#allocation4], 1 }

</bundles_post_ra>
